<compile_context>
chip_gen: v6e
topology: v6e:2x2x1
jax: 0.10.0
libtpu: 0.0.40
codegen_flags: <defaults>
</compile_context>

<pallas_src>
import functools

import jax
import jax.numpy as jnp
from jax.experimental import pallas as pl
from jax.experimental.pallas import tpu as pltpu

_LANES = 128


def _mean_kernel(x_ref, o_ref, *, frames, split_f32):
    # x_ref : (bm, 128*frames) lane-dense input tile
    # o_ref : (bm, 128)        lane-dense output tile (mean over frames)
    kt = frames * _LANES

    # Block-diagonal 0/1 selection matrix, built in-kernel (division-free):
    #   sel[i, j] = 1  iff  j*frames <= i < (j+1)*frames   (i.e. i // frames == j)
    i = jax.lax.broadcasted_iota(jnp.int32, (kt, _LANES), 0)
    j = jax.lax.broadcasted_iota(jnp.int32, (kt, _LANES), 1)
    sel = jnp.logical_and(i >= j * frames, i < (j + 1) * frames)

    x = x_ref[...]
    if split_f32:
        # Explicit 2-pass bf16 split of the f32 LHS.  The RHS is exactly
        # representable in bf16 (0/1), so (x_hi + x_lo) @ sel reproduces
        # precision=HIGH accuracy (~2^-16 relative) with only 2 MXU passes.
        avg = jnp.where(sel, 1.0, 0.0).astype(jnp.bfloat16)
        x_hi = x.astype(jnp.bfloat16)
        x_lo = (x - x_hi.astype(jnp.float32)).astype(jnp.bfloat16)
        acc = jnp.dot(x_hi, avg, preferred_element_type=jnp.float32)
        acc = acc + jnp.dot(x_lo, avg, preferred_element_type=jnp.float32)
    else:
        # bf16 (and other sub-f32) inputs: single MXU pass, f32 accumulation.
        avg = jnp.where(sel, 1.0, 0.0).astype(x.dtype)
        acc = jnp.dot(x, avg, preferred_element_type=jnp.float32)

    # Exact 1/frames scale on the f32 accumulator, then cast to output dtype.
    o_ref[...] = (acc * (1.0 / frames)).astype(o_ref.dtype)


def _round_up(a, b):
    return (a + b - 1) // b * b


def linemean_mat(x, *, target_block_bytes=8 * 1024 * 1024):
    """Pallas implementation of linemean_mat.forward.

    Args:
      x: (N, C, H, W, T) array.
    Returns:
      (N, H, W, C) array == x.mean(axis=-1).transpose(0, 2, 3, 1)
    """
    N, C, H, W, T = x.shape
    P = N * C * H * W                        # total independent pixels
    itemsize = jnp.dtype(x.dtype).itemsize
    # Packed sublane tile of the dtype: 8 for f32, 16 for bf16, 32 for int8/fp8.
    sublane = max(8, 32 // itemsize)

    # Lane-dense view: rows of (128 pixels x T frames).
    R = pl.cdiv(P, _LANES)
    R_pad = _round_up(R, sublane)
    P_pad = R_pad * _LANES

    x_flat = x.reshape(P, T)
    if P_pad != P:
        # Only shapes with P % (128*sublane) != 0 pay this extra HBM copy;
        # the padded rows are discarded by the [:P] slice below.
        x_flat = jnp.pad(x_flat, ((0, P_pad - P), (0, 0)))
    # Contiguous reinterpretation: x_lanes[r, p*T + t] == x_flat[r*128 + p, t]
    x_lanes = x_flat.reshape(R_pad, _LANES * T)

    # Rows per block: ~target_block_bytes of input, multiple of the sublane
    # tile, never more than the array, and leaving >= 2 grid steps when
    # possible so the "parallel" axis can shard across both TCs on megacore.
    bytes_per_row = _LANES * T * itemsize
    bm = max(sublane, (target_block_bytes // bytes_per_row) // sublane * sublane)
    bm = min(bm, R_pad)
    if R_pad >= 2 * sublane:
        bm = min(bm, _round_up(pl.cdiv(R_pad, 2), sublane))
    grid = (pl.cdiv(R_pad, bm),)             # last block may be partial

    # Double-buffered footprint + margin (stays well inside v7x's 64 MiB VMEM).
    in_block_bytes = bm * _LANES * T * itemsize
    out_block_bytes = bm * _LANES * itemsize
    vmem_limit = min(64 * 1024 * 1024,
                     2 * (in_block_bytes + out_block_bytes) + 4 * 1024 * 1024)

    kernel = functools.partial(
        _mean_kernel, frames=T, split_f32=(x.dtype == jnp.float32))

    out_lanes = pl.pallas_call(
        kernel,
        out_shape=jax.ShapeDtypeStruct((R_pad, _LANES), x.dtype),
        grid=grid,
        in_specs=[pl.BlockSpec((bm, _LANES * T), lambda i: (i, 0))],
        out_specs=pl.BlockSpec((bm, _LANES), lambda i: (i, 0)),
        compiler_params=pltpu.CompilerParams(
            dimension_semantics=("parallel",),
            vmem_limit_bytes=vmem_limit,
        ),
    )(x_lanes)

    # Layout glue on the reduced (T-times smaller) tensor: un-pad, un-flatten
    # to NCHW, then permute to NHWC.
    mean = out_lanes.reshape(P_pad)[:P].reshape(N, C, H, W)
    # TODO(synk): when C % 128 == 0 the NCHW->NHWC permute could be fused into
    # the kernel via the out index_map (saves ~2/(T+3) HBM traffic); for small
    # C the NHWC output would be lane-sparse, so keep the plain-JAX transpose.
    return mean.transpose(0, 2, 3, 1)


if __name__ == "__main__":
    key = jax.random.PRNGKey(0)
    # batch=2, channels=4, spatial=16x16, frames (seq) = 8  -> (N, C, H, W, T)
    x = jax.random.normal(key, (2, 4, 16, 16, 8), dtype=jnp.float32)

    fn = jax.jit(linemean_mat)
    out = jax.block_until_ready(fn(x))

    # Reference (plain JAX) check of the PyTorch semantics.
    ref = jnp.transpose(jnp.mean(x, axis=-1), (0, 2, 3, 1))
    assert out.shape == ref.shape == (2, 16, 16, 4), out.shape
    max_err = float(jnp.max(jnp.abs(out - ref)))
    assert jnp.allclose(out, ref, atol=1e-5, rtol=1e-5), f"mismatch vs reference: {max_err}"

    print("KERNEL_OK")
</pallas_src>

<mosaic_0001>
module attributes {stable_mosaic.version = 11 : i64} {
  func.func @_mean_kernel(%arg0: i32, %arg1: memref<8x1024xf32, #tpu.memory_space<vmem>>, %arg2: memref<8x128xf32, #tpu.memory_space<vmem>>) attributes {dimension_semantics = [#tpu.dimension_semantics<parallel>], iteration_bounds = array<i64: 2>, scalar_prefetch = 0 : i64, scratch_operands = 0 : i64, tpu.core_type = #tpu.core_type<tc>, window_params = [{transform_indices = @transform_0, window_bounds = array<i64: 8, 1024>}, {transform_indices = @transform_1, window_bounds = array<i64: 8, 128>}]} {
    %0 = tpu.iota {dimensions = array<i32: 0>} : vector<1024x128xi32>
    %1 = tpu.iota {dimensions = array<i32: 1>} : vector<1024x128xi32>
    %c8_i32 = arith.constant 8 : i32
    %2 = vector.broadcast %c8_i32 : i32 to vector<1024x128xi32>
    %3 = arith.muli %1, %2 : vector<1024x128xi32>
    %4 = arith.cmpi sge, %0, %3 : vector<1024x128xi32>
    %c1_i32 = arith.constant 1 : i32
    %5 = vector.broadcast %c1_i32 : i32 to vector<1024x128xi32>
    %6 = arith.addi %1, %5 : vector<1024x128xi32>
    %c8_i32_0 = arith.constant 8 : i32
    %7 = vector.broadcast %c8_i32_0 : i32 to vector<1024x128xi32>
    %8 = arith.muli %6, %7 : vector<1024x128xi32>
    %9 = arith.cmpi slt, %0, %8 : vector<1024x128xi32>
    %10 = arith.andi %4, %9 : vector<1024x128xi1>
    %c0 = arith.constant 0 : index
    %c0_1 = arith.constant 0 : index
    %11 = vector.load %arg1[%c0, %c0_1] : memref<8x1024xf32, #tpu.memory_space<vmem>>, vector<8x1024xf32>
    %cst = arith.constant 1.000000e+00 : f32
    %cst_2 = arith.constant 0.000000e+00 : f32
    %12 = vector.broadcast %cst : f32 to vector<1024x128xf32>
    %13 = vector.broadcast %cst_2 : f32 to vector<1024x128xf32>
    %14 = arith.select %10, %12, %13 : vector<1024x128xi1>, vector<1024x128xf32>
    %15 = arith.truncf %14 : vector<1024x128xf32> to vector<1024x128xbf16>
    %16 = arith.truncf %11 : vector<8x1024xf32> to vector<8x1024xbf16>
    %17 = arith.extf %16 : vector<8x1024xbf16> to vector<8x1024xf32>
    %18 = arith.subf %11, %17 : vector<8x1024xf32>
    %19 = arith.truncf %18 : vector<8x1024xf32> to vector<8x1024xbf16>
    %cst_3 = arith.constant dense<0.000000e+00> : vector<8x128xf32>
    %20 = tpu.matmul %16, %15, %cst_3 {dimension_numbers = #tpu.dot_dimension_numbers<[1], [0], [0], [1], [0, 0, 1, 1], [], []>} : vector<8x1024xbf16>, vector<1024x128xbf16>, vector<8x128xf32> -> vector<8x128xf32>
    %cst_4 = arith.constant dense<0.000000e+00> : vector<8x128xf32>
    %21 = tpu.matmul %19, %15, %cst_4 {dimension_numbers = #tpu.dot_dimension_numbers<[1], [0], [0], [1], [0, 0, 1, 1], [], []>} : vector<8x1024xbf16>, vector<1024x128xbf16>, vector<8x128xf32> -> vector<8x128xf32>
    %22 = arith.addf %20, %21 : vector<8x128xf32>
    %cst_5 = arith.constant 1.250000e-01 : f32
    %23 = vector.broadcast %cst_5 : f32 to vector<8x128xf32>
    %24 = arith.mulf %22, %23 : vector<8x128xf32>
    %c0_6 = arith.constant 0 : index
    %c0_7 = arith.constant 0 : index
    %25 = vector.load %arg2[%c0_6, %c0_7] : memref<8x128xf32, #tpu.memory_space<vmem>>, vector<8x128xf32>
    tpu.vector_store %arg2[%c0_6, %c0_7], %24 {strides = array<i32>} : memref<8x128xf32, #tpu.memory_space<vmem>>, vector<8x128xf32>,
    return
  }
  func.func @transform_0(%arg0: i32) -> (i32, i32) {
    %c0_i32 = arith.constant 0 : i32
    %c0_i32_0 = arith.constant 0 : i32
    return %arg0, %c0_i32 : i32, i32
  }
  func.func @transform_1(%arg0: i32) -> (i32, i32) {
    %c0_i32 = arith.constant 0 : i32
    %c0_i32_0 = arith.constant 0 : i32
    return %arg0, %c0_i32 : i32, i32
  }
}

</mosaic_0001>

<bundles_post_ra>
// kernel: linemean_mat.1
= control target key start
LH: loop header
LB: loop body
LE: loop exit
PB: predicated region body
PF: predicated region fallthrough
CT: control target
= control target key end

     0   :  { %s1712_s6 = smov 0   ;;  %s3708_s0 = inlined_call_operand.vmem [shape: f32[16,1024], index: 0, kind: input, shape index: {}]   ;;  %s3709_s1 = inlined_call_operand.vmem [shape: f32[16,128], index: 1, kind: output, shape index: {}]  }
   0x1 LB: > { %s1241_s7 = sadd.s32 4294967295, %s1699_s6   ;;  %p1245_p0 = scmp.ge.s32.totalorder %s1699_s6, 1  ;;  %s1699_s6 = sphi %s1712_s6, %s11_s6  }
   0x2   : > { %p87_p1 = scmp.lt.s32.totalorder %s1699_s6, 3 }
   0x4   : > { %p88_p2 = pnand %p1245_p0, %p87_p1 }
   0x6   : > { %91 = sbr.rel (%p88_p2) target bundleno = 483 (0x1e3), region = 24 }
   0xb   : > { %v116_v0 = vlaneseq  ;;  %v3783_v15 = vmov 1.0|1.0   ;;  %v3980_v16 = vmov 0  ;;  %v3984_v20 = vmov 0  ;;  %p106_p3 = scmp.lt.s32.totalorder %s1241_s7, 1 }
   0xc   : > { %v3986_v22 = vmov 0  ;;  %v3988_v24 = vmov 0  ;;  %v3990_v26 = vmov 0  ;;  %v3992_v28 = vmov 0 }
   0xd   : > { %v1720_v1 = vshrl.u32 %v116_v0, 7  ;;  %v246_v2 = vand.u32 127, %v116_v0  ;;  %v3994_v30 = vmov 0  ;;  %v3996_v32 = vmov 0  ;;  %s4580_s7 = smov (!%p106_p3, %s1241_s7), 1 }
   0xe   : > { %v3998_v34 = vmov 0  ;;  %v4000_v36 = vmov 0  ;;  %v4002_v38 = vmov 0  ;;  %v4004_v40 = vmov 0  ;;  %s1507_s8 = sshll.u32 %s4580_s7, 6  ;;  %s1248_s12 = sshll.u32 %s4580_s7, 3 }
   0xf   : > { %v147_v3 = vadd.s32 240, %v1720_v1  ;;  %v148_v4 = vadd.s32 248, %v1720_v1  ;;  %v1724_v5 = vmul.u32 8, %v246_v2  ;;  %v376_v6 = vadd.s32 1, %v246_v2  ;;  %s2040_s11 = scalar_lea.vmem %s3708_s0, %s1507_s8  ;;  %s114_s15 = scalar_lea.vmem %s3709_s1, %s1248_s12 }
  0x10   : > { %v179_v7 = vadd.s32 496, %v1720_v1  ;;  %v180_v9 = vadd.s32 504, %v1720_v1  ;;  %v131_v10 = vadd.s32 112, %v1720_v1  ;;  %v132_v12 = vadd.s32 120, %v1720_v1 }
  0x11   : > { %vm278_vm0 = vcmp.ge.s32.totalorder %v147_v3, %v1724_v5  ;;  %v1728_v8 = vmul.u32 8, %v376_v6  ;;  %vm279_vm1 = vcmp.ge.s32.totalorder %v148_v4, %v1724_v5  ;;  %v163_v14 = vadd.s32 368, %v1720_v1 }
  0x12   : > { %vm310_vm5 = vcmp.ge.s32.totalorder %v179_v7, %v1724_v5  ;;  %vm311_vm8 = vcmp.ge.s32.totalorder %v180_v9, %v1724_v5  ;;  %vm262_vm12 = vcmp.ge.s32.totalorder %v131_v10, %v1724_v5  ;;  %v164_v17 = vadd.s32 376, %v1720_v1 }
  0x13   : > { %vm408_vm2 = vcmp.lt.s32.totalorder %v147_v3, %v1728_v8  ;;  %vm409_vm3 = vcmp.lt.s32.totalorder %v148_v4, %v1728_v8  ;;  %vm440_vm6 = vcmp.lt.s32.totalorder %v179_v7, %v1728_v8  ;;  %vm441_vm9 = vcmp.lt.s32.totalorder %v180_v9, %v1728_v8  ;;  %v635_v3 = vld [vmem:[%s2040_s11 + $0x8] sm:$0xff]  ;;  %v637_v4 = vld [vmem:[%s2040_s11 + $0x18] sm:$0xff] }
  0x14   : > { %vm1735_vm4 = vmand %vm278_vm0, %vm408_vm2  ;;  %vm392_vm13 = vcmp.lt.s32.totalorder %v131_v10, %v1728_v8  ;;  %vm263_vm15 = vcmp.ge.s32.totalorder %v132_v12, %v1724_v5  ;;  %vm393_vm0 = vcmp.lt.s32.totalorder %v132_v12, %v1728_v8  ;;  %v145_v19 = vadd.s32 224, %v1720_v1 }
  0x15   : > { %vm1742_vm7 = vmand %vm279_vm1, %vm409_vm3  ;;  %vm294_vm3 = vcmp.ge.s32.totalorder %v163_v14, %v1724_v5  ;;  %v146_v21 = vadd.s32 232, %v1720_v1  ;;  %v177_v23 = vadd.s32 480, %v1720_v1  ;;  %v178_v25 = vadd.s32 488, %v1720_v1 }
  0x16   : > { %vm3711_vm10 = vmpackc.low %vm1742_vm7, %vm1735_vm4  ;;  %v129_v27 = vadd.s32 96, %v1720_v1  ;;  %v130_v29 = vadd.s32 104, %v1720_v1  ;;  %v161_v31 = vadd.s32 352, %v1720_v1  ;;  %v162_v33 = vadd.s32 360, %v1720_v1 }
  0x17   : > { %1508 = vmatprep.subr.msk.bf16.mxu0 %vm3711_vm10, %v3783_v15  ;;  %vm1759_vm11 = vmand %vm310_vm5, %vm440_vm6  ;;  %vm424_vm5 = vcmp.lt.s32.totalorder %v163_v14, %v1728_v8  ;;  %vm277_vm10 = vcmp.ge.s32.totalorder %v146_v21, %v1724_v5  ;;  %v143_v35 = vadd.s32 208, %v1720_v1  ;;  %v144_v37 = vadd.s32 216, %v1720_v1 }
  0x18   : > { %v3981_v16 = vsel %vm1759_vm11, 4294967295, %v3980_v16  ;;  %vm1766_vm14 = vmand %vm311_vm8, %vm441_vm9  ;;  %vm295_vm8 = vcmp.ge.s32.totalorder %v164_v17, %v1724_v5  ;;  %vm425_vm9 = vcmp.lt.s32.totalorder %v164_v17, %v1728_v8  ;;  %v175_v39 = vadd.s32 464, %v1720_v1 }
  0x19   : > { %vm3710_vm1 = vmpackc.low %vm1766_vm14, %vm1759_vm11  ;;  %vm407_vm11 = vcmp.lt.s32.totalorder %v146_v21, %v1728_v8  ;;  %v176_v41 = vadd.s32 472, %v1720_v1  ;;  %v4006_v42 = vmov 0  ;;  %v127_v43 = vadd.s32 80, %v1720_v1 }
  0x1a   : > { %1530 = vmatprep.subr.msk.bf16.mxu1 %vm3710_vm1, %v3783_v15  ;;  %vm1783_vm2 = vmand %vm262_vm12, %vm392_vm13  ;;  %v4008_v44 = vmov 0  ;;  %v128_v45 = vadd.s32 88, %v1720_v1  ;;  %v4010_v46 = vmov 0  ;;  %v159_v47 = vadd.s32 336, %v1720_v1 }
  0x1b   : > { %v3985_v20 = vsel %vm1783_vm2, 4294967295, %v3984_v20  ;;  %vm1790_vm6 = vmand %vm263_vm15, %vm393_vm0  ;;  %vm276_vm15 = vcmp.ge.s32.totalorder %v145_v19, %v1724_v5  ;;  %vm406_vm0 = vcmp.lt.s32.totalorder %v145_v19, %v1728_v8  ;;  %v4012_v48 = vmov 0 }
  0x1c   : > { %v3987_v22 = vsel %vm1790_vm6, 4294967295, %v3986_v22  ;;  %vm3713_vm12 = vmpackc.low %vm1790_vm6, %vm1783_vm2  ;;  %vm309_vm2 = vcmp.ge.s32.totalorder %v178_v25, %v1724_v5  ;;  %vm439_vm6 = vcmp.lt.s32.totalorder %v178_v25, %v1728_v8  ;;  %v160_v49 = vadd.s32 344, %v1720_v1 }
  0x1d   : > { %1509 = vmatpush3.bf16.msk.msra.mxu0 %vm3713_vm12, %v3783_v15  ;;  %vm1807_vm13 = vmand %vm294_vm3, %vm424_vm5  ;;  %v4014_v50 = vmov 0  ;;  %v141_v51 = vadd.s32 192, %v1720_v1  ;;  %v4016_v52 = vmov 0  ;;  %v142_v53 = vadd.s32 200, %v1720_v1 }
  0x1e   : > { %v3989_v24 = vsel %vm1807_vm13, 4294967295, %v3988_v24  ;;  %vm1814_vm1 = vmand %vm295_vm8, %vm425_vm9  ;;  %vm308_vm8 = vcmp.ge.s32.totalorder %v177_v23, %v1724_v5  ;;  %vm438_vm9 = vcmp.lt.s32.totalorder %v177_v23, %v1728_v8  ;;  %v4018_v54 = vmov 0 }
  0x1f   : > { %v3991_v26 = vsel %vm1814_vm1, 4294967295, %v3990_v26  ;;  %vm3716_vm3 = vmpackc.low %vm1814_vm1, %vm1807_vm13  ;;  %vm261_vm13 = vcmp.ge.s32.totalorder %v130_v29, %v1724_v5  ;;  %vm391_vm1 = vcmp.lt.s32.totalorder %v130_v29, %v1728_v8  ;;  %v173_v55 = vadd.s32 448, %v1720_v1 }
  0x20   : > { %1531 = vmatpush3.bf16.msk.msra.mxu1 %vm3716_vm3, %v3783_v15  ;;  %vm1831_vm5 = vmand %vm276_vm15, %vm406_vm0  ;;  %vm390_vm0 = vcmp.lt.s32.totalorder %v129_v27, %v1728_v8  ;;  %v4020_v56 = vmov 0  ;;  %v174_v57 = vadd.s32 456, %v1720_v1  ;;  %v4022_v58 = vmov 0 }
  0x21   : > { %v3993_v28 = vsel %vm1831_vm5, 4294967295, %v3992_v28  ;;  %vm1838_vm12 = vmand %vm277_vm10, %vm407_vm11  ;;  %vm260_vm11 = vcmp.ge.s32.totalorder %v129_v27, %v1724_v5  ;;  %v125_v59 = vadd.s32 64, %v1720_v1  ;;  %v4024_v60 = vmov 0 }
  0x22   : > { %v3995_v30 = vsel %vm1838_vm12, 4294967295, %v3994_v30  ;;  %vm3719_vm15 = vmpackc.low %vm1838_vm12, %vm1831_vm5  ;;  %vm293_vm5 = vcmp.ge.s32.totalorder %v162_v33, %v1724_v5  ;;  %vm423_vm12 = vcmp.lt.s32.totalorder %v162_v33, %v1728_v8  ;;  %v126_v61 = vadd.s32 72, %v1720_v1 }
  0x23   : > { %1510 = vmatprep.subr.msk.bf16.mxu0 %vm3719_vm15, %v3783_v15  ;;  %vm1855_vm10 = vmand %vm308_vm8, %vm438_vm9  ;;  %vm422_vm9 = vcmp.lt.s32.totalorder %v161_v31, %v1728_v8  ;;  %v4026_v62 = vmov 0  ;;  %v157_v63 = vadd.s32 320, %v1720_v1  ;;  %v4028_v0 = vmov 0 }
  0x24   : > { %v3997_v32 = vsel %vm1855_vm10, 4294967295, %v3996_v32  ;;  %vm1862_vm3 = vmand %vm309_vm2, %vm439_vm6  ;;  %vm292_vm6 = vcmp.ge.s32.totalorder %v161_v31, %v1724_v5  ;;  %v158_v2 = vadd.s32 328, %v1720_v1  ;;  %v4030_v6 = vmov 0 }
  0x25   : > { %v3999_v34 = vsel %vm1862_vm3, 4294967295, %v3998_v34  ;;  %vm3722_vm8 = vmpackc.low %vm1862_vm3, %vm1855_vm10  ;;  %vm275_vm10 = vcmp.ge.s32.totalorder %v144_v37, %v1724_v5  ;;  %vm389_vm3 = vcmp.lt.s32.totalorder %v128_v45, %v1728_v8  ;;  %v139_v7 = vadd.s32 176, %v1720_v1 }
  0x26   : > { %1532 = vmatprep.subr.msk.bf16.mxu1 %vm3722_vm8, %v3783_v15  ;;  %vm1879_vm2 = vmand %vm260_vm11, %vm390_vm0  ;;  %vm404_vm0 = vcmp.lt.s32.totalorder %v143_v35, %v1728_v8  ;;  %v4032_v9 = vmov 0  ;;  %v140_v10 = vadd.s32 184, %v1720_v1  ;;  %v2092_v12 = vpack.c.bf16 %v635_v3, %v635_v3 }
  0x27   : > { %v4001_v36 = vsel %vm1879_vm2, 4294967295, %v4000_v36  ;;  %vm1886_vm15 = vmand %vm261_vm13, %vm391_vm1  ;;  %vm274_vm13 = vcmp.ge.s32.totalorder %v143_v35, %v1724_v5  ;;  %v2094_v14 = vpack.c.bf16 %v637_v4, %v637_v4  ;;  %v4034_v17 = vmov 0 }
  0x28   : > { %v4003_v38 = vsel %vm1886_vm15, 4294967295, %v4002_v38  ;;  %vm3725_vm11 = vmpackc.low %vm1886_vm15, %vm1879_vm2  ;;  %vm405_vm2 = vcmp.lt.s32.totalorder %v144_v37, %v1728_v8  ;;  %vm307_vm15 = vcmp.ge.s32.totalorder %v176_v41, %v1724_v5  ;;  %v171_v19 = vadd.s32 432, %v1720_v1 }
  0x29   : > { %1511 = vmatpush3.bf16.msk.msra.mxu0 %vm3725_vm11, %v3783_v15  ;;  %vm1903_vm1 = vmand %vm292_vm6, %vm422_vm9  ;;  %vm436_vm9 = vcmp.lt.s32.totalorder %v175_v39, %v1728_v8  ;;  %v172_v21 = vadd.s32 440, %v1720_v1  ;;  %v4037_v23 = vmov 0  ;;  %v843_v25 = vunpack.c.l.bf16 %v2092_v12 }
  0x2a   : > { %v4005_v40 = vsel %vm1903_vm1, 4294967295, %v4004_v40  ;;  %vm1910_vm8 = vmand %vm293_vm5, %vm423_vm12  ;;  %vm306_vm5 = vcmp.ge.s32.totalorder %v175_v39, %v1724_v5  ;;  %v845_v27 = vunpack.c.l.bf16 %v2094_v14  ;;  %v4039_v29 = vmov 0 }
  0x2b   : > { %v4007_v42 = vsel %vm1910_vm8, 4294967295, %v4006_v42  ;;  %vm3728_vm6 = vmpackc.low %vm1910_vm8, %vm1903_vm1  ;;  %vm437_vm1 = vcmp.lt.s32.totalorder %v176_v41, %v1728_v8  ;;  %vm259_vm8 = vcmp.ge.s32.totalorder %v128_v45, %v1724_v5  ;;  %v123_v31 = vadd.s32 48, %v1720_v1 }
  0x2c   : > { %1533 = vmatpush3.bf16.msk.msra.mxu1 %vm3728_vm6, %v3783_v15  ;;  %vm1927_vm12 = vmand %vm274_vm13, %vm404_vm0  ;;  %vm388_vm0 = vcmp.lt.s32.totalorder %v127_v43, %v1728_v8  ;;  %v851_v33 = vsub.f32 %v635_v3, %v843_v25  ;;  %v853_v35 = vsub.f32 %v637_v4, %v845_v27  ;;  %v4041_v37 = vmov 0 }
  0x2d   : > { %v4009_v44 = vsel %vm1927_vm12, 4294967295, %v4008_v44  ;;  %vm1934_vm11 = vmand %vm275_vm10, %vm405_vm2  ;;  %vm258_vm2 = vcmp.ge.s32.totalorder %v127_v43, %v1724_v5  ;;  %v124_v39 = vadd.s32 56, %v1720_v1  ;;  %v4043_v41 = vmov 0 }
  0x2e   : > { %v4011_v46 = vsel %vm1934_vm11, 4294967295, %v4010_v46  ;;  %vm3731_vm13 = vmpackc.low %vm1934_vm11, %vm1927_vm12  ;;  %vm291_vm12 = vcmp.ge.s32.totalorder %v160_v49, %v1724_v5  ;;  %vm433_vm11 = vcmp.lt.s32.totalorder %v172_v21, %v1728_v8  ;;  %v859_v43 = vpack.c.bf16 %v851_v33, %v851_v33 }
  0x2f   : > { %1512 = vmatprep.subr.msk.bf16.mxu0 %vm3731_vm13, %v3783_v15  ;;  %vm1953_vm10 = vmand %vm306_vm5, %vm436_vm9  ;;  %vm420_vm9 = vcmp.lt.s32.totalorder %v159_v47, %v1728_v8  ;;  %v861_v45 = vpack.c.bf16 %v853_v35, %v853_v35  ;;  %v170_v3 = vadd.s32 424, %v1720_v1  ;;  %v4055_v4 = vmov 0 }
  0x30   : > { %v4013_v48 = vsel %vm1953_vm10, 4294967295, %v4012_v48  ;;  %vm1960_vm6 = vmand %vm307_vm15, %vm437_vm1  ;;  %vm290_vm1 = vcmp.ge.s32.totalorder %v159_v47, %v1724_v5  ;;  %v155_v47 = vadd.s32 304, %v1720_v1  ;;  %898 = vmatprep.mubr.bf16.mxu0 %v859_v43  ;;  %v153_v25 = vadd.s32 288, %v1720_v1 }
  0x31   : > { %v4015_v50 = vsel %vm1960_vm6, 4294967295, %v4014_v50  ;;  %vm3734_vm5 = vmpackc.low %vm1960_vm6, %vm1953_vm10  ;;  %vm421_vm10 = vcmp.lt.s32.totalorder %v160_v49, %v1728_v8  ;;  %vm273_vm6 = vcmp.ge.s32.totalorder %v142_v53, %v1724_v5  ;;  %v4045_v49 = vmov 0  ;;  %938 = vmatprep.mubr.bf16.mxu1 %v861_v45 }
  0x32   : > { %1534 = vmatprep.subr.msk.bf16.mxu1 %vm3734_vm5, %v3783_v15  ;;  %vm1981_vm15 = vmand %vm258_vm2, %vm388_vm0  ;;  %vm402_vm0 = vcmp.lt.s32.totalorder %v141_v51, %v1728_v8  ;;  %v4061_v27 = vmov 0  ;;  %v4064_v33 = vmov 0  ;;  %v135_v35 = vadd.s32 144, %v1720_v1 }
  0x33   : > { %v4017_v52 = vsel %vm1981_vm15, 4294967295, %v4016_v52  ;;  %vm1988_vm13 = vmand %vm259_vm8, %vm389_vm3  ;;  %vm272_vm8 = vcmp.ge.s32.totalorder %v141_v51, %v1724_v5  ;;  %v156_v51 = vadd.s32 312, %v1720_v1  ;;  %v136_v43 = vadd.s32 152, %v1720_v1 }
  0x34   : > { %v4019_v54 = vsel %vm1988_vm13, 4294967295, %v4018_v54  ;;  %vm3737_vm2 = vmpackc.low %vm1988_vm13, %vm1981_vm15  ;;  %vm403_vm15 = vcmp.lt.s32.totalorder %v142_v53, %v1728_v8  ;;  %vm257_vm13 = vcmp.ge.s32.totalorder %v126_v61, %v1724_v5  ;;  %v4047_v53 = vmov 0 }
  0x35   : > { %1513 = vmatpush3.bf16.msk.msra.mxu0 %vm3737_vm2, %v3783_v15  ;;  %vm2005_vm3 = vmand %vm290_vm1, %vm420_vm9  ;;  %vm434_vm9 = vcmp.lt.s32.totalorder %v173_v55, %v1728_v8  ;;  %v4070_v45 = vmov 0 }
  0x36   : > { %v4021_v56 = vsel %vm2005_vm3, 4294967295, %v4020_v56  ;;  %vm2013_vm5 = vmand %vm291_vm12, %vm421_vm10  ;;  %vm304_vm10 = vcmp.ge.s32.totalorder %v173_v55, %v1724_v5  ;;  %v137_v55 = vadd.s32 160, %v1720_v1 }
  0x37   : > { %v4023_v58 = vsel %vm2013_vm5, 4294967295, %v4022_v58  ;;  %vm3738_vm1 = vmpackc.low %vm2013_vm5, %vm2005_vm3  ;;  %vm386_vm3 = vcmp.lt.s32.totalorder %v125_v59, %v1728_v8 }
  0x38   : > { %1535 = vmatpush3.bf16.msk.msra.mxu1 %vm3738_vm1, %v3783_v15  ;;  %vm2030_vm12 = vmand %vm272_vm8, %vm402_vm0  ;;  %vm305_vm8 = vcmp.ge.s32.totalorder %v174_v57, %v1724_v5  ;;  %vm435_vm0 = vcmp.lt.s32.totalorder %v174_v57, %v1728_v8  ;;  %v4049_v57 = vmov 0 }
  0x39   : > { %v4025_v60 = vsel %vm2030_vm12, 4294967295, %v4024_v60  ;;  %vm2042_vm2 = vmand %vm273_vm6, %vm403_vm15  ;;  %vm256_vm15 = vcmp.ge.s32.totalorder %v125_v59, %v1724_v5  ;;  %v138_v59 = vadd.s32 168, %v1720_v1 }
  0x3a   : > { %v4027_v62 = vsel %vm2042_vm2, 4294967295, %v4026_v62  ;;  %vm3742_vm1 = vmpackc.low %vm2042_vm2, %vm2030_vm12  ;;  %vm289_vm12 = vcmp.ge.s32.totalorder %v158_v2, %v1724_v5  ;;  %vm303_vm2 = vcmp.ge.s32.totalorder %v172_v21, %v1724_v5  ;;  %v4059_v21 = vmov 0 }
  0x3b   : > { %1514 = vmatprep.subr.msk.bf16.mxu0 %vm3742_vm1, %v3783_v15  ;;  %vm2059_vm6 = vmand %vm304_vm10, %vm434_vm9  ;;  %vm387_vm1 = vcmp.lt.s32.totalorder %v126_v61, %v1728_v8  ;;  %v4051_v61 = vmov 0 }
  0x3c   : > { %v4029_v0 = vsel %vm2059_vm6, 4294967295, %v4028_v0  ;;  %vm2068_vm5 = vmand %vm305_vm8, %vm435_vm0  ;;  %vm418_vm0 = vcmp.lt.s32.totalorder %v157_v63, %v1728_v8 }
  0x3d   : > { %v4031_v6 = vsel %vm2068_vm5, 4294967295, %v4030_v6  ;;  %vm3744_vm10 = vmpackc.low %vm2068_vm5, %vm2059_vm6  ;;  %vm400_vm6 = vcmp.lt.s32.totalorder %v139_v7, %v1728_v8 }
  0x3e   : > { %1536 = vmatprep.subr.msk.bf16.mxu1 %vm3744_vm10, %v3783_v15  ;;  %vm2086_vm8 = vmand %vm256_vm15, %vm386_vm3  ;;  %vm419_vm10 = vcmp.lt.s32.totalorder %v158_v2, %v1728_v8  ;;  %vm270_vm15 = vcmp.ge.s32.totalorder %v139_v7, %v1724_v5  ;;  %v4053_v2 = vmov 0  ;;  %v121_v7 = vadd.s32 32, %v1720_v1 }
  0x3f   : > { %v4033_v9 = vsel %vm2086_vm8, 4294967295, %v4032_v9  ;;  %vm2096_vm9 = vmand %vm257_vm13, %vm387_vm1  ;;  %vm4036_vm13 = vcmp.ge.s32.totalorder %v157_v63, %v1724_v5  ;;  %v169_v63 = vadd.s32 416, %v1720_v1 }
  0x40   : > { %v4035_v17 = vsel %vm2096_vm9, 4294967295, %v4034_v17  ;;  %vm3747_vm3 = vmpackc.low %vm2096_vm9, %vm2086_vm8  ;;  %vm401_vm8 = vcmp.lt.s32.totalorder %v140_v10, %v1728_v8 }
  0x41   : > { %1515 = vmatpush3.bf16.msk.msra.mxu0 %vm3747_vm3, %v3783_v15  ;;  %vm2116_vm1 = vmand %vm4036_vm13, %vm418_vm0  ;;  %vm271_vm3 = vcmp.ge.s32.totalorder %v140_v10, %v1724_v5  ;;  %vm432_vm13 = vcmp.lt.s32.totalorder %v171_v19, %v1728_v8  ;;  %v4057_v10 = vmov 0 }
  0x42   : > { %v4038_v23 = vsel %vm2116_vm1, 4294967295, %v4037_v23  ;;  %vm2124_vm5 = vmand %vm289_vm12, %vm419_vm10  ;;  %vm302_vm10 = vcmp.ge.s32.totalorder %v171_v19, %v1724_v5  ;;  %v122_v19 = vadd.s32 40, %v1720_v1 }
  0x43   : > { %v4040_v29 = vsel %vm2124_vm5, 4294967295, %v4039_v29  ;;  %vm3752_vm0 = vmpackc.low %vm2124_vm5, %vm2116_vm1  ;;  %vm255_vm1 = vcmp.ge.s32.totalorder %v124_v39, %v1724_v5  ;;  %vm385_vm5 = vcmp.lt.s32.totalorder %v124_v39, %v1728_v8  ;;  %v4067_v39 = vmov 0 }
  0x44   : > { %1537 = vmatpush3.bf16.msk.msra.mxu1 %vm3752_vm0, %v3783_v15  ;;  %vm2141_vm12 = vmand %vm270_vm15, %vm400_vm6  ;;  %vm384_vm15 = vcmp.lt.s32.totalorder %v123_v31, %v1728_v8 }
  0x45   : > { %v4042_v37 = vsel %vm2141_vm12, 4294967295, %v4041_v37  ;;  %vm2148_vm9 = vmand %vm271_vm3, %vm401_vm8  ;;  %vm254_vm3 = vcmp.ge.s32.totalorder %v123_v31, %v1724_v5  ;;  %v154_v31 = vadd.s32 296, %v1720_v1 }
  0x46   : > { %v4044_v41 = vsel %vm2148_vm9, 4294967295, %v4043_v41  ;;  %vm3755_vm6 = vmpackc.low %vm2148_vm9, %vm2141_vm12  ;;  %vm287_vm12 = vcmp.ge.s32.totalorder %v156_v51, %v1724_v5  ;;  %vm417_vm9 = vcmp.lt.s32.totalorder %v156_v51, %v1728_v8  ;;  %v4073_v51 = vmov 0 }
  0x47   : > { %1516 = vmatprep.subr.msk.bf16.mxu0 %vm3755_vm6, %v3783_v15  ;;  %vm2165_vm8 = vmand %vm302_vm10, %vm432_vm13  ;;  %vm416_vm13 = vcmp.lt.s32.totalorder %v155_v47, %v1728_v8 }
  0x48   : > { %v4046_v49 = vsel %vm2165_vm8, 4294967295, %v4045_v49  ;;  %vm2172_vm0 = vmand %vm303_vm2, %vm433_vm11  ;;  %vm286_vm2 = vcmp.ge.s32.totalorder %v155_v47, %v1724_v5  ;;  %v167_v47 = vadd.s32 400, %v1720_v1 }
  0x49   : > { %v4048_v53 = vsel %vm2172_vm0, 4294967295, %v4047_v53  ;;  %vm3758_vm10 = vmpackc.low %vm2172_vm0, %vm2165_vm8  ;;  %vm269_vm8 = vcmp.ge.s32.totalorder %v138_v59, %v1724_v5  ;;  %vm399_vm0 = vcmp.lt.s32.totalorder %v138_v59, %v1728_v8  ;;  %v4076_v59 = vmov 0 }
  0x4a   : > { %1538 = vmatprep.subr.msk.bf16.mxu1 %vm3758_vm10, %v3783_v15  ;;  %vm2189_vm11 = vmand %vm254_vm3, %vm384_vm15  ;;  %vm398_vm15 = vcmp.lt.s32.totalorder %v137_v55, %v1728_v8 }
  0x4b   : > { %v4050_v57 = vsel %vm2189_vm11, 4294967295, %v4049_v57  ;;  %vm2196_vm6 = vmand %vm255_vm1, %vm385_vm5  ;;  %vm268_vm1 = vcmp.ge.s32.totalorder %v137_v55, %v1724_v5  ;;  %v168_v55 = vadd.s32 408, %v1720_v1 }
  0x4c   : > { %v4052_v61 = vsel %vm2196_vm6, 4294967295, %v4051_v61  ;;  %vm3761_vm3 = vmpackc.low %vm2196_vm6, %vm2189_vm11  ;;  %vm301_vm11 = vcmp.ge.s32.totalorder %v170_v3, %v1724_v5  ;;  %vm431_vm6 = vcmp.lt.s32.totalorder %v170_v3, %v1728_v8  ;;  %v4079_v3 = vmov 0 }
  0x4d   : > { %1517 = vmatpush3.bf16.msk.msra.mxu0 %vm3761_vm3, %v3783_v15  ;;  %vm2213_vm5 = vmand %vm286_vm2, %vm416_vm13  ;;  %vm430_vm13 = vcmp.lt.s32.totalorder %v169_v63, %v1728_v8 }
  0x4e   : > { %v4054_v2 = vsel %vm2213_vm5, 4294967295, %v4053_v2  ;;  %vm2220_vm10 = vmand %vm287_vm12, %vm417_vm9  ;;  %vm300_vm12 = vcmp.ge.s32.totalorder %v169_v63, %v1724_v5  ;;  %v119_v63 = vadd.s32 16, %v1720_v1 }
  0x4f   : > { %v4056_v4 = vsel %vm2220_vm10, 4294967295, %v4055_v4  ;;  %vm3764_vm2 = vmpackc.low %vm2220_vm10, %vm2213_vm5  ;;  %vm253_vm5 = vcmp.ge.s32.totalorder %v122_v19, %v1724_v5  ;;  %vm383_vm10 = vcmp.lt.s32.totalorder %v122_v19, %v1728_v8  ;;  %v4082_v19 = vmov 0 }
  0x50   : > { %1539 = vmatpush3.bf16.msk.msra.mxu1 %vm3764_vm2, %v3783_v15  ;;  %vm2237_vm9 = vmand %vm268_vm1, %vm398_vm15  ;;  %vm382_vm15 = vcmp.lt.s32.totalorder %v121_v7, %v1728_v8 }
  0x51   : > { %v4058_v10 = vsel %vm2237_vm9, 4294967295, %v4057_v10  ;;  %vm2244_vm3 = vmand %vm269_vm8, %vm399_vm0  ;;  %vm252_vm8 = vcmp.ge.s32.totalorder %v121_v7, %v1724_v5  ;;  %v120_v7 = vadd.s32 24, %v1720_v1 }
  0x52   : > { %v4060_v21 = vsel %vm2244_vm3, 4294967295, %v4059_v21  ;;  %vm3767_vm1 = vmpackc.low %vm2244_vm3, %vm2237_vm9  ;;  %vm285_vm9 = vcmp.ge.s32.totalorder %v154_v31, %v1724_v5  ;;  %vm415_vm3 = vcmp.lt.s32.totalorder %v154_v31, %v1728_v8  ;;  %v4085_v31 = vmov 0 }
  0x53   : > { %1518 = vmatprep.subr.msk.bf16.mxu0 %vm3767_vm1, %v3783_v15  ;;  %vm2261_vm0 = vmand %vm300_vm12, %vm430_vm13  ;;  %vm414_vm13 = vcmp.lt.s32.totalorder %v153_v25, %v1728_v8 }
  0x54   : > { %v4062_v27 = vsel %vm2261_vm0, 4294967295, %v4061_v27  ;;  %vm2268_vm2 = vmand %vm301_vm11, %vm431_vm6  ;;  %vm284_vm11 = vcmp.ge.s32.totalorder %v153_v25, %v1724_v5  ;;  %v151_v25 = vadd.s32 272, %v1720_v1 }
  0x55   : > { %4063 = vst [vmem:[#allocation2_spill] sm:$0xff] %v4062_v27  ;;  %v4065_v33 = vsel %vm2268_vm2, 4294967295, %v4064_v33  ;;  %vm3770_vm12 = vmpackc.low %vm2268_vm2, %vm2261_vm0  ;;  %vm267_vm0 = vcmp.ge.s32.totalorder %v136_v43, %v1724_v5  ;;  %vm397_vm2 = vcmp.lt.s32.totalorder %v136_v43, %v1728_v8  ;;  %v4088_v43 = vmov 0 }
  0x56   : > { %4066 = vst [vmem:[#allocation3_spill] sm:$0xff] %v4065_v33  ;;  %1540 = vmatprep.subr.msk.bf16.mxu1 %vm3770_vm12, %v3783_v15  ;;  %vm2285_vm6 = vmand %vm252_vm8, %vm382_vm15  ;;  %vm396_vm15 = vcmp.lt.s32.totalorder %v135_v35, %v1728_v8  ;;  %v4133_v33 = vmov 0 }
  0x57   : > { %v4068_v39 = vsel %vm2285_vm6, 4294967295, %v4067_v39  ;;  %vm2292_vm1 = vmand %vm253_vm5, %vm383_vm10  ;;  %vm266_vm5 = vcmp.ge.s32.totalorder %v135_v35, %v1724_v5  ;;  %v152_v35 = vadd.s32 280, %v1720_v1 }
  0x58   : > { %4069 = vst [vmem:[#allocation4_spill] sm:$0xff] %v4068_v39  ;;  %v4071_v45 = vsel %vm2292_vm1, 4294967295, %v4070_v45  ;;  %vm3773_vm8 = vmpackc.low %vm2292_vm1, %vm2285_vm6  ;;  %vm299_vm6 = vcmp.ge.s32.totalorder %v168_v55, %v1724_v5  ;;  %v639_v39 = vld [vmem:[%s2040_s11 + $0x28] sm:$0xff] }
  0x59   : > { %4072 = vst [vmem:[#allocation5_spill] sm:$0xff] %v4071_v45  ;;  %1519 = vmatpush3.bf16.msk.msra.mxu0 %vm3773_vm8, %v3783_v15  ;;  %vm2309_vm10 = vmand %vm284_vm11, %vm414_vm13  ;;  %vm428_vm13 = vcmp.lt.s32.totalorder %v167_v47, %v1728_v8  ;;  %vm413_vm1 = vcmp.lt.s32.totalorder %v152_v35, %v1728_v8  ;;  %v641_v45 = vld [vmem:[%s2040_s11 + $0x38] sm:$0xff] }
  0x5a   : > { %v4074_v51 = vsel %vm2309_vm10, 4294967295, %v4073_v51  ;;  %vm2316_vm12 = vmand %vm285_vm9, %vm415_vm3  ;;  %vm298_vm9 = vcmp.ge.s32.totalorder %v167_v47, %v1724_v5  ;;  %v133_v47 = vadd.s32 128, %v1720_v1  ;;  %v2508_v27 = vpack.c.bf16 %v641_v45, %v641_v45 }
  0x5b   : > { %4075 = vst [vmem:[#allocation6_spill] sm:$0xff] %v4074_v51  ;;  %v4077_v59 = vsel %vm2316_vm12, 4294967295, %v4076_v59  ;;  %vm3776_vm11 = vmpackc.low %vm2316_vm12, %vm2309_vm10  ;;  %vm429_vm10 = vcmp.lt.s32.totalorder %v168_v55, %v1728_v8  ;;  %vm251_vm12 = vcmp.ge.s32.totalorder %v120_v7, %v1724_v5  ;;  %v634_v55 = vld [vmem:[%s2040_s11] sm:$0xff]  ;;  %v4094_v51 = vmov 0 }
  0x5c   : > { %4078 = vst [vmem:[#allocation7_spill] sm:$0xff] %v4077_v59  ;;  %1541 = vmatpush3.bf16.msk.msra.mxu1 %vm3776_vm11, %v3783_v15  ;;  %vm2333_vm3 = vmand %vm266_vm5, %vm396_vm15  ;;  %vm380_vm15 = vcmp.lt.s32.totalorder %v119_v63, %v1728_v8  ;;  %v4099_v59 = vmov 0  ;;  %v4377_v13 = vld [vmem:[#allocation2_spill] sm:$0xff] }
  0x5d   : > { %v4080_v3 = vsel %vm2333_vm3, 4294967295, %v4079_v3  ;;  %vm2340_vm8 = vmand %vm267_vm0, %vm397_vm2  ;;  %vm250_vm0 = vcmp.ge.s32.totalorder %v119_v63, %v1724_v5  ;;  %v4091_v63 = vmov 0  ;;  %4125 = vst [vmem:[#allocation25_spill] sm:$0xff] %v2508_v27  ;;  %v4375_v11 = vld [vmem:[#allocation3_spill] sm:$0xff] }
  0x5e   : > { %4081 = vst [vmem:[#allocation8_spill] sm:$0xff] %v4080_v3  ;;  %v4083_v19 = vsel %vm2340_vm8, 4294967295, %v4082_v19  ;;  %vm3779_vm5 = vmpackc.low %vm2340_vm8, %vm2333_vm3  ;;  %vm381_vm3 = vcmp.lt.s32.totalorder %v120_v7, %v1728_v8  ;;  %v134_v7 = vadd.s32 136, %v1720_v1  ;;  %vm283_vm8 = vcmp.ge.s32.totalorder %v152_v35, %v1724_v5 }
  0x5f   : > { %4084 = vst [vmem:[#allocation9_spill] sm:$0xff] %v4083_v19  ;;  %1520 = vmatprep.subr.msk.bf16.mxu0 %vm3779_vm5, %v3783_v15  ;;  %vm2357_vm2 = vmand %vm298_vm9, %vm428_vm13  ;;  %vm412_vm13 = vcmp.lt.s32.totalorder %v151_v25, %v1728_v8  ;;  %v166_v35 = vadd.s32 392, %v1720_v1  ;;  %v4102_v3 = vmov 0  ;;  %v4109_v19 = vmov 0  ;;  %v4382_v18 = vld [vmem:[#allocation4_spill] sm:$0xff] }
  0x60   : > { %v4086_v31 = vsel %vm2357_vm2, 4294967295, %v4085_v31  ;;  %vm2364_vm11 = vmand %vm299_vm6, %vm429_vm10  ;;  %vm282_vm10 = vcmp.ge.s32.totalorder %v151_v25, %v1724_v5  ;;  %v636_v25 = vld [vmem:[%s2040_s11 + $0x10] sm:$0xff] }
  0x61   : > { %4087 = vst [vmem:[#allocation10_spill] sm:$0xff] %v4086_v31  ;;  %v4089_v43 = vsel %vm2364_vm11, 4294967295, %v4088_v43  ;;  %vm3788_vm9 = vmpackc.low %vm2364_vm11, %vm2357_vm2  ;;  %v2400_v31 = vpack.c.bf16 %v634_v55, %v634_v55  ;;  %vm265_vm2 = vcmp.ge.s32.totalorder %v134_v7, %v1724_v5  ;;  %vm395_vm11 = vcmp.lt.s32.totalorder %v134_v7, %v1728_v8 }
  0x62   : > { %4090 = vst [vmem:[#allocation11_spill] sm:$0xff] %v4089_v43  ;;  %1542 = vmatprep.subr.msk.bf16.mxu1 %vm3788_vm9, %v3783_v15  ;;  %vm2382_vm6 = vmand %vm250_vm0, %vm380_vm15  ;;  %v165_v15 = vadd.s32 384, %v1720_v1  ;;  %v4098_v43 = vmov 1.0|1.0   ;;  %vm394_vm15 = vcmp.lt.s32.totalorder %v133_v47, %v1728_v8  ;;  %v118_v7 = vadd.s32 8, %v1720_v1 }
  0x63   : > { %v4092_v63 = vsel %vm2382_vm6, 4294967295, %v4091_v63  ;;  %vm2389_vm5 = vmand %vm251_vm12, %vm381_vm3  ;;  %4097 = vst [vmem:[#allocation14_spill] sm:$0xff] %v2400_v31  ;;  %vm264_vm3 = vcmp.ge.s32.totalorder %v133_v47, %v1724_v5  ;;  %v4106_v47 = vmov 0 }
  0x64   : > { %4093 = vst [vmem:[#allocation12_spill] sm:$0xff] %v4092_v63  ;;  %v4095_v51 = vsel %vm2389_vm5, 4294967295, %v4094_v51  ;;  %vm3794_vm0 = vmpackc.low %vm2389_vm5, %vm2382_vm6  ;;  %v2426_v63 = vpack.c.bf16 %v636_v25, %v636_v25  ;;  %vm297_vm6 = vcmp.ge.s32.totalorder %v166_v35, %v1724_v5 }
  0x65   : > { %4096 = vst [vmem:[#allocation13_spill] sm:$0xff] %v4095_v51  ;;  %1521 = vmatpush3.bf16.msk.msra.mxu0 %vm3794_vm0, %v4098_v43  ;;  %vm2409_vm12 = vmand %vm282_vm10, %vm412_vm13  ;;  %vm426_vm13 = vcmp.lt.s32.totalorder %v165_v15, %v1728_v8  ;;  %v842_v51 = vunpack.c.l.bf16 %v2400_v31  ;;  %v4112_v31 = vmov 0 }
  0x66   : > { %v4100_v59 = vsel %vm2409_vm12, 4294967295, %v4099_v59  ;;  %vm2416_vm9 = vmand %vm283_vm8, %vm413_vm1  ;;  %4105 = vst [vmem:[#allocation17_spill] sm:$0xff] %v2426_v63  ;;  %vm296_vm8 = vcmp.ge.s32.totalorder %v165_v15, %v1724_v5  ;;  %v149_v15 = vadd.s32 256, %v1720_v1 }
  0x67   : > { %4101 = vst [vmem:[#allocation15_spill] sm:$0xff] %v4100_v59  ;;  %v4103_v3 = vsel %vm2416_vm9, 4294967295, %v4102_v3  ;;  %vm3798_vm10 = vmpackc.low %vm2416_vm9, %vm2409_vm12  ;;  %v844_v59 = vunpack.c.l.bf16 %v2426_v63  ;;  %v4118_v63 = vmov 0 }
  0x68   : > { %4104 = vst [vmem:[#allocation16_spill] sm:$0xff] %v4103_v3  ;;  %1543 = vmatpush3.bf16.msk.msra.mxu1 %vm3798_vm10, %v4098_v43  ;;  %vm2434_vm1 = vmand %vm264_vm3, %vm394_vm15  ;;  %vm427_vm3 = vcmp.lt.s32.totalorder %v166_v35, %v1728_v8  ;;  %vm378_vm10 = vcmp.lt.s32.totalorder %v1720_v1, %v1728_v8  ;;  %v150_v35 = vadd.s32 264, %v1720_v1  ;;  %v4115_v3 = vmov 0 }
  0x69   : > { %v4107_v47 = vsel %vm2434_vm1, 4294967295, %v4106_v47  ;;  %vm2442_vm0 = vmand %vm265_vm2, %vm395_vm11  ;;  %vm248_vm2 = vcmp.ge.s32.totalorder %v1720_v1, %v1724_v5  ;;  %vm410_vm9 = vcmp.lt.s32.totalorder %v149_v15, %v1728_v8 }
  0x6a   : > { %4108 = vst [vmem:[#allocation18_spill] sm:$0xff] %v4107_v47  ;;  %v4110_v19 = vsel %vm2442_vm0, 4294967295, %v4109_v19  ;;  %vm3802_vm15 = vmpackc.low %vm2442_vm0, %vm2434_vm1  ;;  %v850_v47 = vsub.f32 %v634_v55, %v842_v51  ;;  %v212_v51 = vadd.s32 760, %v1720_v1  ;;  %v4121_v55 = vmov 0 }
  0x6b   : > { %4111 = vst [vmem:[#allocation19_spill] sm:$0xff] %v4110_v19  ;;  %1522 = vmatprep.subr.msk.bf16.mxu0 %vm3802_vm15, %v4098_v43  ;;  %vm2459_vm11 = vmand %vm296_vm8, %vm426_vm13  ;;  %vm249_vm15 = vcmp.ge.s32.totalorder %v118_v7, %v1724_v5  ;;  %vm379_vm8 = vcmp.lt.s32.totalorder %v118_v7, %v1728_v8  ;;  %v211_v19 = vadd.s32 752, %v1720_v1  ;;  %vm281_vm0 = vcmp.ge.s32.totalorder %v150_v35, %v1724_v5 }
  0x6c   : > { %v4113_v31 = vsel %vm2459_vm11, 4294967295, %v4112_v31  ;;  %vm2469_vm12 = vmand %vm297_vm6, %vm427_vm3  ;;  %vm280_vm3 = vcmp.ge.s32.totalorder %v149_v15, %v1724_v5  ;;  %vm411_vm5 = vcmp.lt.s32.totalorder %v150_v35, %v1728_v8  ;;  %v852_v7 = vsub.f32 %v636_v25, %v844_v59 }
  0x6d   : > { %4114 = vst [vmem:[#allocation20_spill] sm:$0xff] %v4113_v31  ;;  %v4116_v3 = vsel %vm2469_vm12, 4294967295, %v4115_v3  ;;  %vm3815_vm13 = vmpackc.low %vm2469_vm12, %vm2459_vm11  ;;  %v858_v31 = vpack.c.bf16 %v850_v47, %v850_v47  ;;  %v2506_v15 = vpack.c.bf16 %v639_v39, %v639_v39  ;;  %v4126_v59 = vmov 0 }
  0x6e   : > { %4117 = vst [vmem:[#allocation21_spill] sm:$0xff] %v4116_v3  ;;  %1544 = vmatprep.subr.msk.bf16.mxu1 %vm3815_vm13, %v4098_v43  ;;  %vm2488_vm6 = vmand %vm248_vm2, %vm378_vm10  ;;  %v243_v3 = vadd.s32 1008, %v1720_v1  ;;  %vm342_vm2 = vcmp.ge.s32.totalorder %v211_v19, %v1724_v5  ;;  %v244_v25 = vadd.s32 1016, %v1720_v1  ;;  %v4129_v47 = vmov 0 }
  0x6f   : > { %v4119_v63 = vsel %vm2488_vm6, 4294967295, %v4118_v63  ;;  %vm2495_vm1 = vmand %vm249_vm15, %vm379_vm8  ;;  %4124 = vst [vmem:[#allocation24_spill] sm:$0xff] %v2506_v15  ;;  %vm472_vm8 = vcmp.lt.s32.totalorder %v211_v19, %v1728_v8  ;;  %vm343_vm11 = vcmp.ge.s32.totalorder %v212_v51, %v1724_v5  ;;  %vm473_vm12 = vcmp.lt.s32.totalorder %v212_v51, %v1728_v8 }
  0x70   : > { %4120 = vst [vmem:[#allocation22_spill] sm:$0xff] %v4119_v63  ;;  %v4122_v55 = vsel %vm2495_vm1, 4294967295, %v4121_v55  ;;  %vm3820_vm10 = vmpackc.low %vm2495_vm1, %vm2488_vm6  ;;  %v860_v35 = vpack.c.bf16 %v852_v7, %v852_v7  ;;  %v195_v63 = vadd.s32 624, %v1720_v1  ;;  %v196_v19 = vadd.s32 632, %v1720_v1 }
  0x71   : > { %4123 = vst [vmem:[#allocation23_spill] sm:$0xff] %v4122_v55  ;;  %1523 = vmatpush3.bf16.msk.msra.mxu0 %vm3820_vm10, %v4098_v43  ;;  %vm2516_vm15 = vmand %vm280_vm3, %vm410_vm9  ;;  %v4131_v51 = vmov 0  ;;  %vm504_vm3 = vcmp.lt.s32.totalorder %v243_v3, %v1728_v8  ;;  %v847_v7 = vunpack.c.l.bf16 %v2506_v15  ;;  %v849_v55 = vunpack.c.l.bf16 %v2508_v27 }
  0x72   : > { %v4127_v59 = vsel %vm2516_vm15, 4294967295, %v4126_v59  ;;  %vm2523_vm13 = vmand %vm281_vm0, %vm411_vm5  ;;  %vm374_vm0 = vcmp.ge.s32.totalorder %v243_v3, %v1724_v5  ;;  %v4135_v27 = vmov 0  ;;  %vm327_vm6 = vcmp.ge.s32.totalorder %v196_v19, %v1724_v5 }
  0x73   : > { %4128 = vst [vmem:[#allocation26_spill] sm:$0xff] %v4127_v59  ;;  %v4130_v47 = vsel %vm2523_vm13, 4294967295, %v4129_v47  ;;  %vm3823_vm9 = vmpackc.low %vm2523_vm13, %vm2516_vm15  ;;  %vm375_vm15 = vcmp.ge.s32.totalorder %v244_v25, %v1724_v5  ;;  %v855_v3 = vsub.f32 %v639_v39, %v847_v7  ;;  %v857_v59 = vsub.f32 %v641_v45, %v849_v55 }
  0x74   : > { %1545 = vmatpush3.bf16.msk.msra.mxu1 %vm3823_vm9, %v4098_v43  ;;  %899 = vmatmul.mubr.bf16.vlgmr.msra.gmra.mxu0 %v858_v31  ;;  %vm2541_vm5 = vmand %vm342_vm2, %vm472_vm8  ;;  %vm505_vm9 = vcmp.lt.s32.totalorder %v244_v25, %v1728_v8  ;;  %v227_v31 = vadd.s32 880, %v1720_v1  ;;  %vm456_vm8 = vcmp.lt.s32.totalorder %v195_v63, %v1728_v8  ;;  %v228_v25 = vadd.s32 888, %v1720_v1 }
  0x75   : > { %v4132_v51 = vsel %vm2541_vm5, 4294967295, %v4131_v51  ;;  %vm2549_vm10 = vmand %vm343_vm11, %vm473_vm12  ;;  %vm326_vm11 = vcmp.ge.s32.totalorder %v195_v63, %v1724_v5  ;;  %v4138_v39 = vmov 0  ;;  %vm457_vm1 = vcmp.lt.s32.totalorder %v196_v19, %v1728_v8 }
  0x76   : > { %v4134_v33 = vsel %vm2549_vm10, 4294967295, %v4133_v33  ;;  %vm3829_vm2 = vmpackc.low %vm2549_vm10, %vm2541_vm5  ;;  %v863_v45 = vpack.c.bf16 %v855_v3, %v855_v3  ;;  %v865_v55 = vpack.c.bf16 %v857_v59, %v857_v59  ;;  %v4141_v63 = vmov 0 }
  0x77   : > { %939 = vmatmul.mubr.bf16.vlgmr.msra.gmra.mxu1 %v860_v35  ;;  %1552 = vmatprep.subr.msk.bf16.mxu0 %vm3829_vm2, %v4098_v43  ;;  %vm2566_vm12 = vmand %vm374_vm0, %vm504_vm3  ;;  %v209_v35 = vadd.s32 736, %v1720_v1  ;;  %vm488_vm3 = vcmp.lt.s32.totalorder %v227_v31, %v1728_v8  ;;  %v210_v59 = vadd.s32 744, %v1720_v1  ;;  %v4144_v19 = vmov 0 }
  0x78   : > { %v4136_v27 = vsel %vm2566_vm12, 4294967295, %v4135_v27  ;;  %vm2573_vm13 = vmand %vm375_vm15, %vm505_vm9  ;;  %vm358_vm9 = vcmp.ge.s32.totalorder %v227_v31, %v1724_v5  ;;  %978 = vmatprep.mubr.bf16.mxu0 %v863_v45  ;;  %vm359_vm5 = vcmp.ge.s32.totalorder %v228_v25, %v1724_v5  ;;  %1018 = vmatprep.mubr.bf16.mxu1 %v865_v55  ;;  %v241_v7 = vadd.s32 992, %v1720_v1 }
  0x79   : > { %4137 = vst [vmem:[#allocation27_spill] sm:$0xff] %v4136_v27  ;;  %v4139_v39 = vsel %vm2573_vm13, 4294967295, %v4138_v39  ;;  %vm3832_vm0 = vmpackc.low %vm2573_vm13, %vm2566_vm12  ;;  %vm489_vm12 = vcmp.lt.s32.totalorder %v228_v25, %v1728_v8  ;;  %v4147_v31 = vmov 0  ;;  %v242_v3 = vadd.s32 1000, %v1720_v1 }
  0x7a   : > { %4140 = vst [vmem:[#allocation28_spill] sm:$0xff] %v4139_v39  ;;  %1574 = vmatprep.subr.msk.bf16.mxu1 %vm3832_vm0, %v4098_v43  ;;  %vm2590_vm15 = vmand %vm326_vm11, %vm456_vm8  ;;  %vm470_vm8 = vcmp.lt.s32.totalorder %v209_v35, %v1728_v8  ;;  %v4150_v25 = vmov 0  ;;  %vm341_vm13 = vcmp.ge.s32.totalorder %v210_v59, %v1724_v5  ;;  %vm471_vm10 = vcmp.lt.s32.totalorder %v210_v59, %v1728_v8 }
  0x7b   : > { %v4142_v63 = vsel %vm2590_vm15, 4294967295, %v4141_v63  ;;  %vm2597_vm2 = vmand %vm327_vm6, %vm457_vm1  ;;  %vm340_vm6 = vcmp.ge.s32.totalorder %v209_v35, %v1724_v5  ;;  %v193_v45 = vadd.s32 608, %v1720_v1  ;;  %v4153_v55 = vmov 0 }
  0x7c   : > { %4143 = vst [vmem:[#allocation29_spill] sm:$0xff] %v4142_v63  ;;  %v4145_v19 = vsel %vm2597_vm2, 4294967295, %v4144_v19  ;;  %vm3835_vm11 = vmpackc.low %vm2597_vm2, %vm2590_vm15  ;;  %v194_v35 = vadd.s32 616, %v1720_v1  ;;  %v4156_v59 = vmov 0  ;;  %vm373_vm15 = vcmp.ge.s32.totalorder %v242_v3, %v1724_v5 }
  0x7d   : > { %4146 = vst [vmem:[#allocation30_spill] sm:$0xff] %v4145_v19  ;;  %1553 = vmatpush3.bf16.msk.msra.mxu0 %vm3835_vm11, %v4098_v43  ;;  %vm2614_vm1 = vmand %vm358_vm9, %vm488_vm3  ;;  %vm502_vm3 = vcmp.lt.s32.totalorder %v241_v7, %v1728_v8  ;;  %vm503_vm2 = vcmp.lt.s32.totalorder %v242_v3, %v1728_v8  ;;  %v226_v3 = vadd.s32 872, %v1720_v1  ;;  %v207_v15 = vadd.s32 720, %v1720_v1 }
  0x7e   : > { %v4148_v31 = vsel %vm2614_vm1, 4294967295, %v4147_v31  ;;  %vm2621_vm0 = vmand %vm359_vm5, %vm489_vm12  ;;  %vm372_vm12 = vcmp.ge.s32.totalorder %v241_v7, %v1724_v5  ;;  %v4159_v7 = vmov 0  ;;  %v4292_v63 = vmov 0 }
  0x7f   : > { %4149 = vst [vmem:[#allocation31_spill] sm:$0xff] %v4148_v31  ;;  %v4151_v25 = vsel %vm2621_vm0, 4294967295, %v4150_v25  ;;  %vm3839_vm9 = vmpackc.low %vm2621_vm0, %vm2614_vm1  ;;  %v225_v31 = vadd.s32 864, %v1720_v1  ;;  %vm325_vm1 = vcmp.ge.s32.totalorder %v194_v35, %v1724_v5  ;;  %vm455_vm0 = vcmp.lt.s32.totalorder %v194_v35, %v1728_v8 }
  0x80   : > { %4152 = vst [vmem:[#allocation32_spill] sm:$0xff] %v4151_v25  ;;  %1575 = vmatpush3.bf16.msk.msra.mxu1 %vm3839_vm9, %v4098_v43  ;;  %vm2638_vm5 = vmand %vm340_vm6, %vm470_vm8  ;;  %vm454_vm8 = vcmp.lt.s32.totalorder %v193_v45, %v1728_v8  ;;  %v4162_v25 = vmov 0  ;;  %v208_v35 = vadd.s32 728, %v1720_v1  ;;  %v4295_v19 = vmov 0 }
  0x81   : > { %v4154_v55 = vsel %vm2638_vm5, 4294967295, %v4153_v55  ;;  %vm2645_vm11 = vmand %vm341_vm13, %vm471_vm10  ;;  %vm324_vm10 = vcmp.ge.s32.totalorder %v193_v45, %v1724_v5  ;;  %v4165_v45 = vmov 0  ;;  %v4301_v39 = vmov 0 }
  0x82   : > { %4155 = vst [vmem:[#allocation33_spill] sm:$0xff] %v4154_v55  ;;  %v4157_v59 = vsel %vm2645_vm11, 4294967295, %v4156_v59  ;;  %vm3844_vm6 = vmpackc.low %vm2645_vm11, %vm2638_vm5  ;;  %v4168_v55 = vmov 0  ;;  %vm357_vm5 = vcmp.ge.s32.totalorder %v226_v3, %v1724_v5  ;;  %vm487_vm11 = vcmp.lt.s32.totalorder %v226_v3, %v1728_v8 }
  0x83   : > { %4158 = vst [vmem:[#allocation34_spill] sm:$0xff] %v4157_v59  ;;  %1554 = vmatprep.subr.msk.bf16.mxu0 %vm3844_vm6, %v4098_v43  ;;  %vm2662_vm13 = vmand %vm372_vm12, %vm502_vm3  ;;  %vm486_vm3 = vcmp.lt.s32.totalorder %v225_v31, %v1728_v8  ;;  %v240_v3 = vadd.s32 984, %v1720_v1  ;;  %v4288_v59 = vmov 0 }
  0x84   : > { %v4160_v7 = vsel %vm2662_vm13, 4294967295, %v4159_v7  ;;  %vm2669_vm9 = vmand %vm373_vm15, %vm503_vm2  ;;  %vm356_vm15 = vcmp.ge.s32.totalorder %v225_v31, %v1724_v5  ;;  %v4171_v31 = vmov 0 }
  0x85   : > { %4161 = vst [vmem:[#allocation35_spill] sm:$0xff] %v4160_v7  ;;  %v4163_v25 = vsel %vm2669_vm9, 4294967295, %v4162_v25  ;;  %vm3849_vm12 = vmpackc.low %vm2669_vm9, %vm2662_vm13  ;;  %v239_v7 = vadd.s32 976, %v1720_v1  ;;  %vm339_vm13 = vcmp.ge.s32.totalorder %v208_v35, %v1724_v5  ;;  %vm469_vm9 = vcmp.lt.s32.totalorder %v208_v35, %v1728_v8 }
  0x86   : > { %4164 = vst [vmem:[#allocation36_spill] sm:$0xff] %v4163_v25  ;;  %1576 = vmatprep.subr.msk.bf16.mxu1 %vm3849_vm12, %v4098_v43  ;;  %vm2686_vm2 = vmand %vm324_vm10, %vm454_vm8  ;;  %vm468_vm8 = vcmp.lt.s32.totalorder %v207_v15, %v1728_v8  ;;  %v4174_v25 = vmov 0  ;;  %v192_v35 = vadd.s32 600, %v1720_v1 }
  0x87   : > { %v4166_v45 = vsel %vm2686_vm2, 4294967295, %v4165_v45  ;;  %vm2693_vm6 = vmand %vm325_vm1, %vm455_vm0  ;;  %vm338_vm1 = vcmp.ge.s32.totalorder %v207_v15, %v1724_v5  ;;  %v4177_v15 = vmov 0 }
  0x88   : > { %4167 = vst [vmem:[#allocation37_spill] sm:$0xff] %v4166_v45  ;;  %v4169_v55 = vsel %vm2693_vm6, 4294967295, %v4168_v55  ;;  %vm3854_vm10 = vmpackc.low %vm2693_vm6, %vm2686_vm2  ;;  %v191_v45 = vadd.s32 592, %v1720_v1  ;;  %vm371_vm2 = vcmp.ge.s32.totalorder %v240_v3, %v1724_v5  ;;  %vm501_vm6 = vcmp.lt.s32.totalorder %v240_v3, %v1728_v8 }
  0x89   : > { %4170 = vst [vmem:[#allocation38_spill] sm:$0xff] %v4169_v55  ;;  %1555 = vmatpush3.bf16.msk.msra.mxu0 %vm3854_vm10, %v4098_v43  ;;  %vm2710_vm0 = vmand %vm356_vm15, %vm486_vm3  ;;  %vm500_vm3 = vcmp.lt.s32.totalorder %v239_v7, %v1728_v8  ;;  %v4180_v55 = vmov 0  ;;  %v224_v3 = vadd.s32 856, %v1720_v1 }
  0x8a   : > { %v4172_v31 = vsel %vm2710_vm0, 4294967295, %v4171_v31  ;;  %vm2717_vm12 = vmand %vm357_vm5, %vm487_vm11  ;;  %vm370_vm5 = vcmp.ge.s32.totalorder %v239_v7, %v1724_v5  ;;  %v4183_v7 = vmov 0 }
  0x8b   : > { %4173 = vst [vmem:[#allocation39_spill] sm:$0xff] %v4172_v31  ;;  %v4175_v25 = vsel %vm2717_vm12, 4294967295, %v4174_v25  ;;  %vm3859_vm15 = vmpackc.low %vm2717_vm12, %vm2710_vm0  ;;  %v223_v31 = vadd.s32 848, %v1720_v1  ;;  %vm323_vm0 = vcmp.ge.s32.totalorder %v192_v35, %v1724_v5  ;;  %vm453_vm12 = vcmp.lt.s32.totalorder %v192_v35, %v1728_v8 }
  0x8c   : > { %4176 = vst [vmem:[#allocation40_spill] sm:$0xff] %v4175_v25  ;;  %1577 = vmatpush3.bf16.msk.msra.mxu1 %vm3859_vm15, %v4098_v43  ;;  %vm2734_vm11 = vmand %vm338_vm1, %vm468_vm8  ;;  %vm452_vm8 = vcmp.lt.s32.totalorder %v191_v45, %v1728_v8  ;;  %v4186_v25 = vmov 0  ;;  %v206_v35 = vadd.s32 712, %v1720_v1 }
  0x8d   : > { %v4178_v15 = vsel %vm2734_vm11, 4294967295, %v4177_v15  ;;  %vm2741_vm10 = vmand %vm339_vm13, %vm469_vm9  ;;  %vm322_vm13 = vcmp.ge.s32.totalorder %v191_v45, %v1724_v5  ;;  %v4189_v45 = vmov 0 }
  0x8e   : > { %4179 = vst [vmem:[#allocation41_spill] sm:$0xff] %v4178_v15  ;;  %v4181_v55 = vsel %vm2741_vm10, 4294967295, %v4180_v55  ;;  %vm3864_vm1 = vmpackc.low %vm2741_vm10, %vm2734_vm11  ;;  %v205_v15 = vadd.s32 704, %v1720_v1  ;;  %vm355_vm11 = vcmp.ge.s32.totalorder %v224_v3, %v1724_v5  ;;  %vm485_vm10 = vcmp.lt.s32.totalorder %v224_v3, %v1728_v8 }
  0x8f   : > { %4182 = vst [vmem:[#allocation42_spill] sm:$0xff] %v4181_v55  ;;  %1556 = vmatprep.subr.msk.bf16.mxu0 %vm3864_vm1, %v4098_v43  ;;  %vm2758_vm9 = vmand %vm370_vm5, %vm500_vm3  ;;  %vm484_vm3 = vcmp.lt.s32.totalorder %v223_v31, %v1728_v8  ;;  %v4192_v55 = vmov 0  ;;  %v238_v3 = vadd.s32 968, %v1720_v1 }
  0x90   : > { %v4184_v7 = vsel %vm2758_vm9, 4294967295, %v4183_v7  ;;  %vm2765_vm15 = vmand %vm371_vm2, %vm501_vm6  ;;  %vm354_vm2 = vcmp.ge.s32.totalorder %v223_v31, %v1724_v5  ;;  %v4195_v31 = vmov 0 }
  0x91   : > { %4185 = vst [vmem:[#allocation43_spill] sm:$0xff] %v4184_v7  ;;  %v4187_v25 = vsel %vm2765_vm15, 4294967295, %v4186_v25  ;;  %vm3869_vm5 = vmpackc.low %vm2765_vm15, %vm2758_vm9  ;;  %v237_v7 = vadd.s32 960, %v1720_v1  ;;  %vm337_vm9 = vcmp.ge.s32.totalorder %v206_v35, %v1724_v5  ;;  %vm467_vm15 = vcmp.lt.s32.totalorder %v206_v35, %v1728_v8 }
  0x92   : > { %4188 = vst [vmem:[#allocation44_spill] sm:$0xff] %v4187_v25  ;;  %1578 = vmatprep.subr.msk.bf16.mxu1 %vm3869_vm5, %v4098_v43  ;;  %vm2782_vm6 = vmand %vm322_vm13, %vm452_vm8  ;;  %vm466_vm8 = vcmp.lt.s32.totalorder %v205_v15, %v1728_v8  ;;  %v4198_v25 = vmov 0  ;;  %v190_v35 = vadd.s32 584, %v1720_v1 }
  0x93   : > { %v4190_v45 = vsel %vm2782_vm6, 4294967295, %v4189_v45  ;;  %vm2789_vm1 = vmand %vm323_vm0, %vm453_vm12  ;;  %vm336_vm0 = vcmp.ge.s32.totalorder %v205_v15, %v1724_v5  ;;  %v4201_v15 = vmov 0 }
  0x94   : > { %4191 = vst [vmem:[#allocation45_spill] sm:$0xff] %v4190_v45  ;;  %v4193_v55 = vsel %vm2789_vm1, 4294967295, %v4192_v55  ;;  %vm3874_vm13 = vmpackc.low %vm2789_vm1, %vm2782_vm6  ;;  %v189_v45 = vadd.s32 576, %v1720_v1  ;;  %vm369_vm6 = vcmp.ge.s32.totalorder %v238_v3, %v1724_v5  ;;  %vm499_vm1 = vcmp.lt.s32.totalorder %v238_v3, %v1728_v8 }
  0x95   : > { %4194 = vst [vmem:[#allocation46_spill] sm:$0xff] %v4193_v55  ;;  %1557 = vmatpush3.bf16.msk.msra.mxu0 %vm3874_vm13, %v4098_v43  ;;  %vm2806_vm12 = vmand %vm354_vm2, %vm484_vm3  ;;  %vm498_vm3 = vcmp.lt.s32.totalorder %v237_v7, %v1728_v8  ;;  %v4204_v55 = vmov 0  ;;  %v222_v3 = vadd.s32 840, %v1720_v1 }
  0x96   : > { %v4196_v31 = vsel %vm2806_vm12, 4294967295, %v4195_v31  ;;  %vm2813_vm5 = vmand %vm355_vm11, %vm485_vm10  ;;  %vm368_vm11 = vcmp.ge.s32.totalorder %v237_v7, %v1724_v5  ;;  %v4207_v7 = vmov 0 }
  0x97   : > { %4197 = vst [vmem:[#allocation47_spill] sm:$0xff] %v4196_v31  ;;  %v4199_v25 = vsel %vm2813_vm5, 4294967295, %v4198_v25  ;;  %vm3879_vm2 = vmpackc.low %vm2813_vm5, %vm2806_vm12  ;;  %v221_v31 = vadd.s32 832, %v1720_v1  ;;  %vm321_vm12 = vcmp.ge.s32.totalorder %v190_v35, %v1724_v5  ;;  %vm451_vm5 = vcmp.lt.s32.totalorder %v190_v35, %v1728_v8 }
  0x98   : > { %4200 = vst [vmem:[#allocation48_spill] sm:$0xff] %v4199_v25  ;;  %1579 = vmatpush3.bf16.msk.msra.mxu1 %vm3879_vm2, %v4098_v43  ;;  %vm2830_vm10 = vmand %vm336_vm0, %vm466_vm8  ;;  %vm450_vm8 = vcmp.lt.s32.totalorder %v189_v45, %v1728_v8  ;;  %v4210_v25 = vmov 0  ;;  %v204_v35 = vadd.s32 696, %v1720_v1 }
  0x99   : > { %v4202_v15 = vsel %vm2830_vm10, 4294967295, %v4201_v15  ;;  %vm2837_vm13 = vmand %vm337_vm9, %vm467_vm15  ;;  %vm320_vm9 = vcmp.ge.s32.totalorder %v189_v45, %v1724_v5  ;;  %v4213_v45 = vmov 0 }
  0x9a   : > { %4203 = vst [vmem:[#allocation49_spill] sm:$0xff] %v4202_v15  ;;  %v4205_v55 = vsel %vm2837_vm13, 4294967295, %v4204_v55  ;;  %vm3884_vm0 = vmpackc.low %vm2837_vm13, %vm2830_vm10  ;;  %v203_v15 = vadd.s32 688, %v1720_v1  ;;  %vm353_vm10 = vcmp.ge.s32.totalorder %v222_v3, %v1724_v5  ;;  %vm483_vm13 = vcmp.lt.s32.totalorder %v222_v3, %v1728_v8 }
  0x9b   : > { %4206 = vst [vmem:[#allocation50_spill] sm:$0xff] %v4205_v55  ;;  %1558 = vmatprep.subr.msk.bf16.mxu0 %vm3884_vm0, %v4098_v43  ;;  %vm2854_vm15 = vmand %vm368_vm11, %vm498_vm3  ;;  %vm482_vm3 = vcmp.lt.s32.totalorder %v221_v31, %v1728_v8  ;;  %v4216_v55 = vmov 0  ;;  %v236_v3 = vadd.s32 952, %v1720_v1 }
  0x9c   : > { %v4208_v7 = vsel %vm2854_vm15, 4294967295, %v4207_v7  ;;  %vm2861_vm2 = vmand %vm369_vm6, %vm499_vm1  ;;  %vm352_vm6 = vcmp.ge.s32.totalorder %v221_v31, %v1724_v5  ;;  %v4219_v31 = vmov 0 }
  0x9d   : > { %4209 = vst [vmem:[#allocation51_spill] sm:$0xff] %v4208_v7  ;;  %v4211_v25 = vsel %vm2861_vm2, 4294967295, %v4210_v25  ;;  %vm3889_vm11 = vmpackc.low %vm2861_vm2, %vm2854_vm15  ;;  %v235_v7 = vadd.s32 944, %v1720_v1  ;;  %vm335_vm15 = vcmp.ge.s32.totalorder %v204_v35, %v1724_v5  ;;  %vm465_vm2 = vcmp.lt.s32.totalorder %v204_v35, %v1728_v8 }
  0x9e   : > { %4212 = vst [vmem:[#allocation52_spill] sm:$0xff] %v4211_v25  ;;  %1580 = vmatprep.subr.msk.bf16.mxu1 %vm3889_vm11, %v4098_v43  ;;  %vm2878_vm1 = vmand %vm320_vm9, %vm450_vm8  ;;  %vm464_vm8 = vcmp.lt.s32.totalorder %v203_v15, %v1728_v8  ;;  %v4222_v25 = vmov 0  ;;  %v188_v35 = vadd.s32 568, %v1720_v1 }
  0x9f   : > { %v4214_v45 = vsel %vm2878_vm1, 4294967295, %v4213_v45  ;;  %vm2885_vm0 = vmand %vm321_vm12, %vm451_vm5  ;;  %vm334_vm12 = vcmp.ge.s32.totalorder %v203_v15, %v1724_v5  ;;  %v4225_v15 = vmov 0 }
  0xa0   : > { %4215 = vst [vmem:[#allocation53_spill] sm:$0xff] %v4214_v45  ;;  %v4217_v55 = vsel %vm2885_vm0, 4294967295, %v4216_v55  ;;  %vm3894_vm9 = vmpackc.low %vm2885_vm0, %vm2878_vm1  ;;  %v187_v45 = vadd.s32 560, %v1720_v1  ;;  %vm367_vm1 = vcmp.ge.s32.totalorder %v236_v3, %v1724_v5  ;;  %vm497_vm0 = vcmp.lt.s32.totalorder %v236_v3, %v1728_v8 }
  0xa1   : > { %4218 = vst [vmem:[#allocation54_spill] sm:$0xff] %v4217_v55  ;;  %1559 = vmatpush3.bf16.msk.msra.mxu0 %vm3894_vm9, %v4098_v43  ;;  %vm2902_vm5 = vmand %vm352_vm6, %vm482_vm3  ;;  %vm496_vm3 = vcmp.lt.s32.totalorder %v235_v7, %v1728_v8  ;;  %v4228_v55 = vmov 0  ;;  %v220_v3 = vadd.s32 824, %v1720_v1 }
  0xa2   : > { %v4220_v31 = vsel %vm2902_vm5, 4294967295, %v4219_v31  ;;  %vm2909_vm11 = vmand %vm353_vm10, %vm483_vm13  ;;  %vm366_vm10 = vcmp.ge.s32.totalorder %v235_v7, %v1724_v5  ;;  %v4231_v7 = vmov 0 }
  0xa3   : > { %4221 = vst [vmem:[#allocation55_spill] sm:$0xff] %v4220_v31  ;;  %v4223_v25 = vsel %vm2909_vm11, 4294967295, %v4222_v25  ;;  %vm3899_vm6 = vmpackc.low %vm2909_vm11, %vm2902_vm5  ;;  %v219_v31 = vadd.s32 816, %v1720_v1  ;;  %vm319_vm5 = vcmp.ge.s32.totalorder %v188_v35, %v1724_v5  ;;  %vm449_vm11 = vcmp.lt.s32.totalorder %v188_v35, %v1728_v8 }
  0xa4   : > { %4224 = vst [vmem:[#allocation56_spill] sm:$0xff] %v4223_v25  ;;  %1581 = vmatpush3.bf16.msk.msra.mxu1 %vm3899_vm6, %v4098_v43  ;;  %vm2926_vm13 = vmand %vm334_vm12, %vm464_vm8  ;;  %vm448_vm8 = vcmp.lt.s32.totalorder %v187_v45, %v1728_v8  ;;  %v4234_v25 = vmov 0  ;;  %v202_v35 = vadd.s32 680, %v1720_v1 }
  0xa5   : > { %v4226_v15 = vsel %vm2926_vm13, 4294967295, %v4225_v15  ;;  %vm2933_vm9 = vmand %vm335_vm15, %vm465_vm2  ;;  %vm318_vm15 = vcmp.ge.s32.totalorder %v187_v45, %v1724_v5  ;;  %v4237_v45 = vmov 0 }
  0xa6   : > { %4227 = vst [vmem:[#allocation57_spill] sm:$0xff] %v4226_v15  ;;  %v4229_v55 = vsel %vm2933_vm9, 4294967295, %v4228_v55  ;;  %vm3904_vm12 = vmpackc.low %vm2933_vm9, %vm2926_vm13  ;;  %v201_v15 = vadd.s32 672, %v1720_v1  ;;  %vm351_vm13 = vcmp.ge.s32.totalorder %v220_v3, %v1724_v5  ;;  %vm481_vm9 = vcmp.lt.s32.totalorder %v220_v3, %v1728_v8 }
  0xa7   : > { %4230 = vst [vmem:[#allocation58_spill] sm:$0xff] %v4229_v55  ;;  %1560 = vmatprep.subr.msk.bf16.mxu0 %vm3904_vm12, %v4098_v43  ;;  %vm2950_vm2 = vmand %vm366_vm10, %vm496_vm3  ;;  %vm480_vm3 = vcmp.lt.s32.totalorder %v219_v31, %v1728_v8  ;;  %v4240_v55 = vmov 0  ;;  %v234_v3 = vadd.s32 936, %v1720_v1 }
  0xa8   : > { %v4232_v7 = vsel %vm2950_vm2, 4294967295, %v4231_v7  ;;  %vm2957_vm6 = vmand %vm367_vm1, %vm497_vm0  ;;  %vm350_vm1 = vcmp.ge.s32.totalorder %v219_v31, %v1724_v5  ;;  %v4243_v31 = vmov 0 }
  0xa9   : > { %4233 = vst [vmem:[#allocation59_spill] sm:$0xff] %v4232_v7  ;;  %v4235_v25 = vsel %vm2957_vm6, 4294967295, %v4234_v25  ;;  %vm3909_vm10 = vmpackc.low %vm2957_vm6, %vm2950_vm2  ;;  %v233_v7 = vadd.s32 928, %v1720_v1  ;;  %vm333_vm2 = vcmp.ge.s32.totalorder %v202_v35, %v1724_v5  ;;  %vm463_vm6 = vcmp.lt.s32.totalorder %v202_v35, %v1728_v8 }
  0xaa   : > { %4236 = vst [vmem:[#allocation60_spill] sm:$0xff] %v4235_v25  ;;  %1582 = vmatprep.subr.msk.bf16.mxu1 %vm3909_vm10, %v4098_v43  ;;  %vm2974_vm0 = vmand %vm318_vm15, %vm448_vm8  ;;  %vm462_vm8 = vcmp.lt.s32.totalorder %v201_v15, %v1728_v8  ;;  %v4246_v25 = vmov 0  ;;  %v186_v35 = vadd.s32 552, %v1720_v1 }
  0xab   : > { %v4238_v45 = vsel %vm2974_vm0, 4294967295, %v4237_v45  ;;  %vm2981_vm12 = vmand %vm319_vm5, %vm449_vm11  ;;  %vm332_vm5 = vcmp.ge.s32.totalorder %v201_v15, %v1724_v5  ;;  %v4249_v15 = vmov 0 }
  0xac   : > { %4239 = vst [vmem:[#allocation61_spill] sm:$0xff] %v4238_v45  ;;  %v4241_v55 = vsel %vm2981_vm12, 4294967295, %v4240_v55  ;;  %vm3914_vm15 = vmpackc.low %vm2981_vm12, %vm2974_vm0  ;;  %v185_v45 = vadd.s32 544, %v1720_v1  ;;  %vm365_vm0 = vcmp.ge.s32.totalorder %v234_v3, %v1724_v5  ;;  %vm495_vm12 = vcmp.lt.s32.totalorder %v234_v3, %v1728_v8 }
  0xad   : > { %4242 = vst [vmem:[#allocation62_spill] sm:$0xff] %v4241_v55  ;;  %1561 = vmatpush3.bf16.msk.msra.mxu0 %vm3914_vm15, %v4098_v43  ;;  %vm2998_vm11 = vmand %vm350_vm1, %vm480_vm3  ;;  %vm494_vm3 = vcmp.lt.s32.totalorder %v233_v7, %v1728_v8  ;;  %v4252_v55 = vmov 0  ;;  %v218_v3 = vadd.s32 808, %v1720_v1 }
  0xae   : > { %v4244_v31 = vsel %vm2998_vm11, 4294967295, %v4243_v31  ;;  %vm3005_vm10 = vmand %vm351_vm13, %vm481_vm9  ;;  %vm364_vm13 = vcmp.ge.s32.totalorder %v233_v7, %v1724_v5  ;;  %v4255_v7 = vmov 0 }
  0xaf   : > { %4245 = vst [vmem:[#allocation63_spill] sm:$0xff] %v4244_v31  ;;  %v4247_v25 = vsel %vm3005_vm10, 4294967295, %v4246_v25  ;;  %vm3919_vm1 = vmpackc.low %vm3005_vm10, %vm2998_vm11  ;;  %v217_v31 = vadd.s32 800, %v1720_v1  ;;  %vm317_vm11 = vcmp.ge.s32.totalorder %v186_v35, %v1724_v5  ;;  %vm447_vm10 = vcmp.lt.s32.totalorder %v186_v35, %v1728_v8 }
  0xb0   : > { %4248 = vst [vmem:[#allocation64_spill] sm:$0xff] %v4247_v25  ;;  %1583 = vmatpush3.bf16.msk.msra.mxu1 %vm3919_vm1, %v4098_v43  ;;  %vm3022_vm9 = vmand %vm332_vm5, %vm462_vm8  ;;  %vm446_vm8 = vcmp.lt.s32.totalorder %v185_v45, %v1728_v8  ;;  %v4258_v25 = vmov 0  ;;  %v200_v35 = vadd.s32 664, %v1720_v1 }
  0xb1   : > { %v4250_v15 = vsel %vm3022_vm9, 4294967295, %v4249_v15  ;;  %vm3029_vm15 = vmand %vm333_vm2, %vm463_vm6  ;;  %vm316_vm2 = vcmp.ge.s32.totalorder %v185_v45, %v1724_v5  ;;  %v4261_v45 = vmov 0 }
  0xb2   : > { %4251 = vst [vmem:[#allocation65_spill] sm:$0xff] %v4250_v15  ;;  %v4253_v55 = vsel %vm3029_vm15, 4294967295, %v4252_v55  ;;  %vm3924_vm5 = vmpackc.low %vm3029_vm15, %vm3022_vm9  ;;  %v199_v15 = vadd.s32 656, %v1720_v1  ;;  %vm349_vm9 = vcmp.ge.s32.totalorder %v218_v3, %v1724_v5  ;;  %vm479_vm15 = vcmp.lt.s32.totalorder %v218_v3, %v1728_v8 }
  0xb3   : > { %4254 = vst [vmem:[#allocation66_spill] sm:$0xff] %v4253_v55  ;;  %1562 = vmatprep.subr.msk.bf16.mxu0 %vm3924_vm5, %v4098_v43  ;;  %vm3046_vm6 = vmand %vm364_vm13, %vm494_vm3  ;;  %vm478_vm3 = vcmp.lt.s32.totalorder %v217_v31, %v1728_v8  ;;  %v4264_v55 = vmov 0  ;;  %v232_v3 = vadd.s32 920, %v1720_v1 }
  0xb4   : > { %v4256_v7 = vsel %vm3046_vm6, 4294967295, %v4255_v7  ;;  %vm3053_vm1 = vmand %vm365_vm0, %vm495_vm12  ;;  %vm348_vm0 = vcmp.ge.s32.totalorder %v217_v31, %v1724_v5  ;;  %v4267_v31 = vmov 0 }
  0xb5   : > { %4257 = vst [vmem:[#allocation67_spill] sm:$0xff] %v4256_v7  ;;  %v4259_v25 = vsel %vm3053_vm1, 4294967295, %v4258_v25  ;;  %vm3929_vm13 = vmpackc.low %vm3053_vm1, %vm3046_vm6  ;;  %v231_v7 = vadd.s32 912, %v1720_v1  ;;  %vm331_vm6 = vcmp.ge.s32.totalorder %v200_v35, %v1724_v5  ;;  %vm461_vm1 = vcmp.lt.s32.totalorder %v200_v35, %v1728_v8 }
  0xb6   : > { %4260 = vst [vmem:[#allocation68_spill] sm:$0xff] %v4259_v25  ;;  %1584 = vmatprep.subr.msk.bf16.mxu1 %vm3929_vm13, %v4098_v43  ;;  %vm3070_vm12 = vmand %vm316_vm2, %vm446_vm8  ;;  %vm460_vm8 = vcmp.lt.s32.totalorder %v199_v15, %v1728_v8  ;;  %v4270_v25 = vmov 0  ;;  %v184_v35 = vadd.s32 536, %v1720_v1 }
  0xb7   : > { %v4262_v45 = vsel %vm3070_vm12, 4294967295, %v4261_v45  ;;  %vm3077_vm5 = vmand %vm317_vm11, %vm447_vm10  ;;  %vm330_vm11 = vcmp.ge.s32.totalorder %v199_v15, %v1724_v5  ;;  %v4273_v15 = vmov 0 }
  0xb8   : > { %4263 = vst [vmem:[#allocation69_spill] sm:$0xff] %v4262_v45  ;;  %v4265_v55 = vsel %vm3077_vm5, 4294967295, %v4264_v55  ;;  %vm3934_vm2 = vmpackc.low %vm3077_vm5, %vm3070_vm12  ;;  %v183_v45 = vadd.s32 528, %v1720_v1  ;;  %vm363_vm12 = vcmp.ge.s32.totalorder %v232_v3, %v1724_v5 }
  0xb9   : > { %4266 = vst [vmem:[#allocation70_spill] sm:$0xff] %v4265_v55  ;;  %1563 = vmatpush3.bf16.msk.msra.mxu0 %vm3934_vm2, %v4098_v43  ;;  %vm3094_vm10 = vmand %vm348_vm0, %vm478_vm3  ;;  %vm492_vm3 = vcmp.lt.s32.totalorder %v231_v7, %v1728_v8  ;;  %v4276_v55 = vmov 0 }
  0xba   : > { %v4268_v31 = vsel %vm3094_vm10, 4294967295, %v4267_v31  ;;  %vm3101_vm13 = vmand %vm349_vm9, %vm479_vm15  ;;  %vm362_vm9 = vcmp.ge.s32.totalorder %v231_v7, %v1724_v5  ;;  %v4279_v7 = vmov 0 }
  0xbb   : > { %4269 = vst [vmem:[#allocation71_spill] sm:$0xff] %v4268_v31  ;;  %v4271_v25 = vsel %vm3101_vm13, 4294967295, %v4270_v25  ;;  %vm3939_vm0 = vmpackc.low %vm3101_vm13, %vm3094_vm10  ;;  %vm493_vm10 = vcmp.lt.s32.totalorder %v232_v3, %v1728_v8  ;;  %v215_v31 = vadd.s32 784, %v1720_v1  ;;  %v216_v3 = vadd.s32 792, %v1720_v1 }
  0xbc   : > { %4272 = vst [vmem:[#allocation72_spill] sm:$0xff] %v4271_v25  ;;  %1585 = vmatpush3.bf16.msk.msra.mxu1 %vm3939_vm0, %v4098_v43  ;;  %vm3118_vm15 = vmand %vm330_vm11, %vm460_vm8  ;;  %vm444_vm8 = vcmp.lt.s32.totalorder %v183_v45, %v1728_v8  ;;  %v4282_v25 = vmov 0  ;;  %vm315_vm13 = vcmp.ge.s32.totalorder %v184_v35, %v1724_v5 }
  0xbd   : > { %v4274_v15 = vsel %vm3118_vm15, 4294967295, %v4273_v15  ;;  %vm3125_vm2 = vmand %vm331_vm6, %vm461_vm1  ;;  %vm314_vm6 = vcmp.ge.s32.totalorder %v183_v45, %v1724_v5  ;;  %v4285_v45 = vmov 0  ;;  %vm477_vm5 = vcmp.lt.s32.totalorder %v216_v3, %v1728_v8 }
  0xbe   : > { %4275 = vst [vmem:[#allocation73_spill] sm:$0xff] %v4274_v15  ;;  %v4277_v55 = vsel %vm3125_vm2, 4294967295, %v4276_v55  ;;  %vm3945_vm11 = vmpackc.low %vm3125_vm2, %vm3118_vm15  ;;  %vm445_vm15 = vcmp.lt.s32.totalorder %v184_v35, %v1728_v8  ;;  %v197_v15 = vadd.s32 640, %v1720_v1  ;;  %v198_v35 = vadd.s32 648, %v1720_v1 }
  0xbf   : > { %4278 = vst [vmem:[#allocation74_spill] sm:$0xff] %v4277_v55  ;;  %1564 = vmatprep.subr.msk.bf16.mxu0 %vm3945_vm11, %v4098_v43  ;;  %vm3142_vm1 = vmand %vm362_vm9, %vm492_vm3  ;;  %v638_v55 = vld [vmem:[%s2040_s11 + $0x20] sm:$0xff]  ;;  %vm476_vm3 = vcmp.lt.s32.totalorder %v215_v31, %v1728_v8  ;;  %vm347_vm2 = vcmp.ge.s32.totalorder %v216_v3, %v1724_v5  ;;  %v230_v3 = vadd.s32 904, %v1720_v1 }
  0xc0   : > { %v4280_v7 = vsel %vm3142_vm1, 4294967295, %v4279_v7  ;;  %vm3149_vm0 = vmand %vm363_vm12, %vm493_vm10  ;;  %vm346_vm10 = vcmp.ge.s32.totalorder %v215_v31, %v1724_v5  ;;  %v640_v31 = vld [vmem:[%s2040_s11 + $0x30] sm:$0xff] }
  0xc1   : > { %4281 = vst [vmem:[#allocation75_spill] sm:$0xff] %v4280_v7  ;;  %v4283_v25 = vsel %vm3149_vm0, 4294967295, %v4282_v25  ;;  %vm3952_vm9 = vmpackc.low %vm3149_vm0, %vm3142_vm1  ;;  %v229_v7 = vadd.s32 896, %v1720_v1  ;;  %vm329_vm1 = vcmp.ge.s32.totalorder %v198_v35, %v1724_v5  ;;  %vm459_vm0 = vcmp.lt.s32.totalorder %v198_v35, %v1728_v8 }
  0xc2   : > { %4284 = vst [vmem:[#allocation76_spill] sm:$0xff] %v4283_v25  ;;  %1586 = vmatprep.subr.msk.bf16.mxu1 %vm3952_vm9, %v4098_v43  ;;  %vm3167_vm12 = vmand %vm314_vm6, %vm444_vm8  ;;  %v3185_v25 = vpack.c.bf16 %v638_v55, %v638_v55  ;;  %vm458_vm8 = vcmp.lt.s32.totalorder %v197_v15, %v1728_v8  ;;  %v182_v35 = vadd.s32 520, %v1720_v1 }
  0xc3   : > { %v4286_v45 = vsel %vm3167_vm12, 4294967295, %v4285_v45  ;;  %vm3174_vm11 = vmand %vm315_vm13, %vm445_vm15  ;;  %vm328_vm15 = vcmp.ge.s32.totalorder %v197_v15, %v1724_v5  ;;  %v4298_v15 = vmov 0 }
  0xc4   : > { %4287 = vst [vmem:[#allocation77_spill] sm:$0xff] %v4286_v45  ;;  %v4289_v59 = vsel %vm3174_vm11, 4294967295, %v4288_v59  ;;  %vm3959_vm6 = vmpackc.low %vm3174_vm11, %vm3167_vm12  ;;  %v181_v45 = vadd.s32 512, %v1720_v1  ;;  %v846_v27 = vunpack.c.l.bf16 %v3185_v25  ;;  %vm361_vm12 = vcmp.ge.s32.totalorder %v230_v3, %v1724_v5 }
  0xc5   : > { %4290 = vst [vmem:[#allocation78_spill] sm:$0xff] %v4289_v59  ;;  %4291 = vst [vmem:[#allocation79_spill] sm:$0xff] %v3185_v25  ;;  %1565 = vmatpush3.bf16.msk.msra.mxu0 %vm3959_vm6, %v4098_v43  ;;  %v3212_v59 = vpack.c.bf16 %v640_v31, %v640_v31 }
  0xc6   : > { %vm3194_vm13 = vmand %vm346_vm10, %vm476_vm3  ;;  %vm490_vm3 = vcmp.lt.s32.totalorder %v229_v7, %v1728_v8 }
  0xc7   : > { %v4293_v63 = vsel %vm3194_vm13, 4294967295, %v4292_v63  ;;  %vm3201_vm9 = vmand %vm347_vm2, %vm477_vm5  ;;  %vm360_vm2 = vcmp.ge.s32.totalorder %v229_v7, %v1724_v5  ;;  %v848_v25 = vunpack.c.l.bf16 %v3212_v59 }
  0xc8   : > { %4294 = vst [vmem:[#allocation80_spill] sm:$0xff] %v4293_v63  ;;  %v4296_v19 = vsel %vm3201_vm9, 4294967295, %v4295_v19  ;;  %vm3962_vm10 = vmpackc.low %vm3201_vm9, %vm3194_vm13  ;;  %v213_v63 = vadd.s32 768, %v1720_v1  ;;  %vm313_vm9 = vcmp.ge.s32.totalorder %v182_v35, %v1724_v5 }
  0xc9   : > { %4297 = vst [vmem:[#allocation81_spill] sm:$0xff] %v4296_v19  ;;  %1587 = vmatpush3.bf16.msk.msra.mxu1 %vm3962_vm10, %v4098_v43  ;;  %vm3220_vm5 = vmand %vm328_vm15, %vm458_vm8  ;;  %vm491_vm10 = vcmp.lt.s32.totalorder %v230_v3, %v1728_v8  ;;  %vm442_vm8 = vcmp.lt.s32.totalorder %v181_v45, %v1728_v8  ;;  %v214_v3 = vadd.s32 776, %v1720_v1 }
  0xca   : > { %v4299_v15 = vsel %vm3220_vm5, 4294967295, %v4298_v15  ;;  %vm3228_vm6 = vmand %vm329_vm1, %vm459_vm0  ;;  %vm312_vm1 = vcmp.ge.s32.totalorder %v181_v45, %v1724_v5 }
  0xcb   : > { %4300 = vst [vmem:[#allocation82_spill] sm:$0xff] %v4299_v15  ;;  %v4302_v39 = vsel %vm3228_vm6, 4294967295, %v4301_v39  ;;  %vm3968_vm15 = vmpackc.low %vm3228_vm6, %vm3220_vm5  ;;  %v854_v15 = vsub.f32 %v638_v55, %v846_v27  ;;  %vm345_vm6 = vcmp.ge.s32.totalorder %v214_v3, %v1724_v5  ;;  %vm475_vm11 = vcmp.lt.s32.totalorder %v214_v3, %v1728_v8  ;;  %v4501_v3 = vld [vmem:[#allocation54_spill] sm:$0xff] }
  0xcc   : > { %1566 = vmatprep.subr.msk.bf16.mxu0 %vm3968_vm15, %v4098_v43  ;;  %vm3245_vm0 = vmand %vm360_vm2, %vm490_vm3  ;;  %vm443_vm15 = vcmp.lt.s32.totalorder %v182_v35, %v1728_v8  ;;  %vm474_vm3 = vcmp.lt.s32.totalorder %v213_v63, %v1728_v8  ;;  %v856_v55 = vsub.f32 %v640_v31, %v848_v25  ;;  %v4491_v25 = vld [vmem:[#allocation48_spill] sm:$0xff]  ;;  %v4493_v31 = vld [vmem:[#allocation47_spill] sm:$0xff] }
  0xcd   : > { %vm3253_vm13 = vmand %vm361_vm12, %vm491_vm10  ;;  %vm344_vm10 = vcmp.ge.s32.totalorder %v213_v63, %v1724_v5  ;;  %v862_v45 = vpack.c.bf16 %v854_v15, %v854_v15  ;;  %v4496_v15 = vld [vmem:[#allocation52_spill] sm:$0xff]  ;;  %v4498_v35 = vld [vmem:[#allocation51_spill] sm:$0xff] }
  0xce   : > { %vm3975_vm2 = vmpackc.low %vm3253_vm13, %vm3245_vm0  ;;  %v864_v8 = vpack.c.bf16 %v856_v55, %v856_v55  ;;  %v4503_v55 = vld [vmem:[#allocation53_spill] sm:$0xff] }
  0xcf   : > { %1588 = vmatprep.subr.msk.bf16.mxu1 %vm3975_vm2, %v4098_v43  ;;  %vm3269_vm12 = vmand %vm312_vm1, %vm442_vm8  ;;  %vm4336_vm2 = vnez %v4007_v42  ;;  %v4412_v42 = vld [vmem:[#allocation15_spill] sm:$0xff] }
  0xd0   : > { %vm3275_vm5 = vmand %vm313_vm9, %vm443_vm15 }
  0xd1   : > { %vm3973_vm1 = vmpackc.low %vm3275_vm5, %vm3269_vm12 }
  0xd2   : > { %1567 = vmatpush3.bf16.msk.msra.mxu0 %vm3973_vm1, %v4098_v43  ;;  %vm3291_vm9 = vmand %vm344_vm10, %vm474_vm3  ;;  %vm4321_vm3 = vnez %v3995_v30  ;;  %v4397_v30 = vld [vmem:[#allocation10_spill] sm:$0xff] }
  0xd3   : > { %vm3295_vm15 = vmand %vm345_vm6, %vm475_vm11  ;;  %vm4318_vm11 = vnez %v3987_v22  ;;  %vm4319_vm6 = vnez %v3985_v20  ;;  %v4385_v20 = vld [vmem:[#allocation9_spill] sm:$0xff]  ;;  %v4387_v22 = vld [vmem:[#allocation8_spill] sm:$0xff] }
  0xd4   : > { %vm4315_vm8 = vmpackc.low %vm1742_vm7, %vm1735_vm4  ;;  %vm4316_vm4 = vnez %v3981_v16  ;;  %v4380_v16 = vld [vmem:[#allocation5_spill] sm:$0xff] }
  0xd5   : > { %1596 = vmatprep.subr.msk.bf16.mxu0 %vm4315_vm8, %v4098_v43  ;;  %vm3974_vm1 = vmpackc.low %vm3295_vm15, %vm3291_vm9  ;;  %979 = vmatmul.mubr.bf16.vlgmr.msra.gmra.mxu0 %v862_v45  ;;  %vm4322_vm8 = vnez %v3993_v28  ;;  %v4395_v28 = vld [vmem:[#allocation11_spill] sm:$0xff]  ;;  %v4506_v45 = vld [vmem:[#allocation58_spill] sm:$0xff] }
  0xd6   : > { %1589 = vmatpush3.bf16.msk.msra.mxu1 %vm3974_vm1, %v4098_v43  ;;  %vm4317_vm7 = vmpackc.low %vm1766_vm14, %vm4316_vm4  ;;  %1058 = vmatprep.mubr.bf16.mxu0 %v2092_v12  ;;  %vm4324_vm14 = vnez %v3991_v26  ;;  %vm4325_vm4 = vnez %v3989_v24  ;;  %v4390_v24 = vld [vmem:[#allocation7_spill] sm:$0xff]  ;;  %v4392_v26 = vld [vmem:[#allocation6_spill] sm:$0xff] }
  0xd7   : > { %1618 = vmatprep.subr.msk.bf16.mxu1 %vm4317_vm7, %v4098_v43  ;;  %vm4320_vm10 = vmpackc.low %vm4318_vm11, %vm4319_vm6  ;;  %vm4327_vm11 = vnez %v3999_v34  ;;  %vm4328_vm6 = vnez %v3997_v32  ;;  %v4400_v32 = vld [vmem:[#allocation13_spill] sm:$0xff]  ;;  %v4402_v34 = vld [vmem:[#allocation12_spill] sm:$0xff] }
  0xd8   : > { %1597 = vmatpush3.bf16.msk.msra.mxu0 %vm4320_vm10, %v4098_v43  ;;  %vm4323_vm1 = vmpackc.low %vm4321_vm3, %vm4322_vm8  ;;  %vm4331_vm3 = vnez %v4001_v36  ;;  %v4405_v36 = vld [vmem:[#allocation19_spill] sm:$0xff]  ;;  %v4449_v12 = vld [vmem:[#allocation17_spill] sm:$0xff] }
  0xd9   : > { %1598 = vmatprep.subr.msk.bf16.mxu0 %vm4323_vm1, %v4098_v43  ;;  %1019 = vmatmul.mubr.bf16.vlgmr.msra.gmra.mxu1 %v864_v8  ;;  %vm4326_vm7 = vmpackc.low %vm4324_vm14, %vm4325_vm4  ;;  %vm4330_vm1 = vnez %v4003_v38  ;;  %vm4333_vm14 = vnez %v4011_v46  ;;  %vm4334_vm4 = vnez %v4009_v44  ;;  %v4407_v38 = vld [vmem:[#allocation18_spill] sm:$0xff]  ;;  %v4415_v44 = vld [vmem:[#allocation21_spill] sm:$0xff] }
  0xda   : > { %1619 = vmatpush3.bf16.msk.msra.mxu1 %vm4326_vm7, %v4098_v43  ;;  %1098 = vmatprep.mubr.bf16.mxu1 %v2094_v14  ;;  %vm4329_vm10 = vmpackc.low %vm4327_vm11, %vm4328_vm6  ;;  %vm4337_vm11 = vnez %v4005_v40  ;;  %v4410_v40 = vld [vmem:[#allocation16_spill] sm:$0xff]  ;;  %v4508_v8 = vld [vmem:[#allocation57_spill] sm:$0xff] }
  0xdb   : > { %1620 = vmatprep.subr.msk.bf16.mxu1 %vm4329_vm10, %v4098_v43  ;;  %vm4332_vm8 = vmpackc.low %vm4330_vm1, %vm4331_vm3  ;;  %vm4339_vm10 = vnez %v4015_v50  ;;  %vm4340_vm1 = vnez %v4013_v48  ;;  %v4417_v46 = vld [vmem:[#allocation20_spill] sm:$0xff]  ;;  %v4420_v48 = vld [vmem:[#allocation23_spill] sm:$0xff] }
  0xdc   : > { %1599 = vmatpush3.bf16.msk.msra.mxu0 %vm4332_vm8, %v4098_v43  ;;  %vm4335_vm7 = vmpackc.low %vm4333_vm14, %vm4334_vm4  ;;  %vm4342_vm8 = vnez %v4019_v54  ;;  %vm4343_vm14 = vnez %v4017_v52  ;;  %v4422_v50 = vld [vmem:[#allocation22_spill] sm:$0xff]  ;;  %v4450_v14 = vld [vmem:[#allocation32_spill] sm:$0xff] }
  0xdd   : > { %1600 = vmatprep.subr.msk.bf16.mxu0 %vm4335_vm7, %v4098_v43  ;;  %vm4338_vm6 = vmpackc.low %vm4336_vm2, %vm4337_vm11  ;;  %vm4345_vm7 = vnez %v4027_v62  ;;  %vm4346_vm2 = vnez %v4025_v60  ;;  %v4429_v52 = vld [vmem:[#allocation26_spill] sm:$0xff]  ;;  %v4440_v62 = vld [vmem:[#allocation29_spill] sm:$0xff] }
  0xde   : > { %1621 = vmatpush3.bf16.msk.msra.mxu1 %vm4338_vm6, %v4098_v43  ;;  %vm4341_vm3 = vmpackc.low %vm4339_vm10, %vm4340_vm1  ;;  %vm4348_vm6 = vnez %v4023_v58  ;;  %vm4349_vm10 = vnez %v4021_v56  ;;  %v4432_v54 = vld [vmem:[#allocation14_spill] sm:$0xff]  ;;  %v4433_v56 = vld [vmem:[#allocation28_spill] sm:$0xff] }
  0xdf   : > { %1622 = vmatprep.subr.msk.bf16.mxu1 %vm4341_vm3, %v4098_v43  ;;  %vm4344_vm4 = vmpackc.low %vm4342_vm8, %vm4343_vm14  ;;  %vm4351_vm3 = vnez %v4031_v6  ;;  %vm4352_vm8 = vnez %v4029_v0  ;;  %v4435_v58 = vld [vmem:[#allocation27_spill] sm:$0xff]  ;;  %v4438_v60 = vld [vmem:[#allocation30_spill] sm:$0xff] }
  0xe0   : > { %1601 = vmatpush3.bf16.msk.msra.mxu0 %vm4344_vm4, %v4098_v43  ;;  %vm4347_vm11 = vmpackc.low %vm4345_vm7, %vm4346_vm2  ;;  %vm4354_vm4 = vnez %v4035_v17  ;;  %vm4355_vm7 = vnez %v4033_v9  ;;  %v4443_v0 = vld [vmem:[#allocation34_spill] sm:$0xff]  ;;  %v4445_v6 = vld [vmem:[#allocation33_spill] sm:$0xff] }
  0xe1   : > { %1602 = vmatprep.subr.msk.bf16.mxu0 %vm4347_vm11, %v4098_v43  ;;  %vm4350_vm1 = vmpackc.low %vm4348_vm6, %vm4349_vm10  ;;  %vm4357_vm11 = vnez %v4044_v41  ;;  %vm4358_vm6 = vnez %v4042_v37  ;;  %v4448_v9 = vld [vmem:[#allocation24_spill] sm:$0xff]  ;;  %v4452_v17 = vld [vmem:[#allocation31_spill] sm:$0xff] }
  0xe2   : > { %1623 = vmatpush3.bf16.msk.msra.mxu1 %vm4350_vm1, %v4098_v43  ;;  %vm4353_vm14 = vmpackc.low %vm4351_vm3, %vm4352_vm8  ;;  %vm4360_vm1 = vnez %v4040_v29  ;;  %vm4361_vm3 = vnez %v4038_v23  ;;  %v4455_v23 = vld [vmem:[#allocation25_spill] sm:$0xff]  ;;  %v4456_v29 = vld [vmem:[#allocation36_spill] sm:$0xff] }
  0xe3   : > { %1624 = vmatprep.subr.msk.bf16.mxu1 %vm4353_vm14, %v4098_v43  ;;  %vm4356_vm2 = vmpackc.low %vm4354_vm4, %vm4355_vm7  ;;  %vm4363_vm14 = vnez %v4048_v53  ;;  %vm4364_vm4 = vnez %v4046_v49  ;;  %v4458_v37 = vld [vmem:[#allocation35_spill] sm:$0xff]  ;;  %v4461_v41 = vld [vmem:[#allocation38_spill] sm:$0xff] }
  0xe4   : > { %1603 = vmatpush3.bf16.msk.msra.mxu0 %vm4356_vm2, %v4098_v43  ;;  %vm4359_vm10 = vmpackc.low %vm4357_vm11, %vm4358_vm6  ;;  %vm4366_vm2 = vnez %v4052_v61  ;;  %vm4367_vm11 = vnez %v4050_v57  ;;  %v4463_v49 = vld [vmem:[#allocation37_spill] sm:$0xff]  ;;  %v4466_v53 = vld [vmem:[#allocation42_spill] sm:$0xff] }
  0xe5   : > { %1604 = vmatprep.subr.msk.bf16.mxu0 %vm4359_vm10, %v4098_v43  ;;  %vm4362_vm8 = vmpackc.low %vm4360_vm1, %vm4361_vm3  ;;  %vm4369_vm10 = vnez %v4060_v21  ;;  %vm4370_vm1 = vnez %v4058_v10  ;;  %v4468_v57 = vld [vmem:[#allocation41_spill] sm:$0xff]  ;;  %v4471_v61 = vld [vmem:[#allocation40_spill] sm:$0xff] }
  0xe6   : > { %1625 = vmatpush3.bf16.msk.msra.mxu1 %vm4362_vm8, %v4098_v43  ;;  %vm4365_vm7 = vmpackc.low %vm4363_vm14, %vm4364_vm4  ;;  %vm4372_vm8 = vnez %v4056_v4  ;;  %vm4373_vm14 = vnez %v4054_v2  ;;  %v4473_v2 = vld [vmem:[#allocation39_spill] sm:$0xff]  ;;  %v4476_v4 = vld [vmem:[#allocation44_spill] sm:$0xff] }
  0xe7   : > { %1626 = vmatprep.subr.msk.bf16.mxu1 %vm4365_vm7, %v4098_v43  ;;  %vm4368_vm6 = vmpackc.low %vm4366_vm2, %vm4367_vm11  ;;  %vm4376_vm7 = vnez %v4375_v11  ;;  %vm4378_vm2 = vnez %v4377_v13  ;;  %v4478_v10 = vld [vmem:[#allocation43_spill] sm:$0xff]  ;;  %v4481_v21 = vld [vmem:[#allocation46_spill] sm:$0xff] }
  0xe8   : > { %1605 = vmatpush3.bf16.msk.msra.mxu0 %vm4368_vm6, %v4098_v43  ;;  %vm4371_vm3 = vmpackc.low %vm4369_vm10, %vm4370_vm1  ;;  %vm4381_vm6 = vnez %v4380_v16  ;;  %vm4383_vm10 = vnez %v4382_v18  ;;  %v4511_v11 = vld [vmem:[#allocation56_spill] sm:$0xff]  ;;  %v4513_v13 = vld [vmem:[#allocation55_spill] sm:$0xff] }
  0xe9   : > { %1606 = vmatprep.subr.msk.bf16.mxu0 %vm4371_vm3, %v4098_v43  ;;  %vm4374_vm4 = vmpackc.low %vm4372_vm8, %vm4373_vm14  ;;  %vm4386_vm3 = vnez %v4385_v20  ;;  %vm4388_vm8 = vnez %v4387_v22  ;;  %v4516_v16 = vld [vmem:[#allocation60_spill] sm:$0xff]  ;;  %v4518_v18 = vld [vmem:[#allocation59_spill] sm:$0xff] }
  0xea   : > { %1627 = vmatpush3.bf16.msk.msra.mxu1 %vm4374_vm4, %v4098_v43  ;;  %vm4379_vm11 = vmpackc.low %vm4376_vm7, %vm4378_vm2  ;;  %vm4391_vm4 = vnez %v4390_v24  ;;  %vm4393_vm7 = vnez %v4392_v26  ;;  %v4521_v20 = vld [vmem:[#allocation62_spill] sm:$0xff]  ;;  %v4523_v22 = vld [vmem:[#allocation61_spill] sm:$0xff] }
  0xeb   : > { %1628 = vmatprep.subr.msk.bf16.mxu1 %vm4379_vm11, %v4098_v43  ;;  %vm4384_vm1 = vmpackc.low %vm4381_vm6, %vm4383_vm10  ;;  %vm4396_vm11 = vnez %v4395_v28  ;;  %vm4398_vm6 = vnez %v4397_v30  ;;  %v4526_v24 = vld [vmem:[#allocation66_spill] sm:$0xff]  ;;  %v4528_v26 = vld [vmem:[#allocation65_spill] sm:$0xff] }
  0xec   : > { %1607 = vmatpush3.bf16.msk.msra.mxu0 %vm4384_vm1, %v4098_v43  ;;  %vm4389_vm14 = vmpackc.low %vm4386_vm3, %vm4388_vm8  ;;  %vm4401_vm1 = vnez %v4400_v32  ;;  %vm4403_vm3 = vnez %v4402_v34  ;;  %v4531_v28 = vld [vmem:[#allocation64_spill] sm:$0xff]  ;;  %v4533_v30 = vld [vmem:[#allocation63_spill] sm:$0xff] }
  0xed   : > { %1608 = vmatprep.subr.msk.bf16.mxu0 %vm4389_vm14, %v4098_v43  ;;  %vm4394_vm2 = vmpackc.low %vm4391_vm4, %vm4393_vm7  ;;  %vm4406_vm14 = vnez %v4405_v36  ;;  %vm4408_vm4 = vnez %v4407_v38  ;;  %v4536_v32 = vld [vmem:[#allocation68_spill] sm:$0xff]  ;;  %v4538_v34 = vld [vmem:[#allocation67_spill] sm:$0xff] }
  0xee   : > { %1629 = vmatpush3.bf16.msk.msra.mxu1 %vm4394_vm2, %v4098_v43  ;;  %vm4399_vm10 = vmpackc.low %vm4396_vm11, %vm4398_vm6  ;;  %vm4411_vm2 = vnez %v4410_v40  ;;  %vm4413_vm11 = vnez %v4412_v42  ;;  %v4541_v36 = vld [vmem:[#allocation70_spill] sm:$0xff]  ;;  %v4543_v38 = vld [vmem:[#allocation69_spill] sm:$0xff] }
  0xef   : > { %1630 = vmatprep.subr.msk.bf16.mxu1 %vm4399_vm10, %v4098_v43  ;;  %vm4404_vm8 = vmpackc.low %vm4401_vm1, %vm4403_vm3  ;;  %vm4416_vm10 = vnez %v4415_v44  ;;  %vm4418_vm1 = vnez %v4417_v46  ;;  %v4546_v40 = vld [vmem:[#allocation74_spill] sm:$0xff]  ;;  %v4548_v42 = vld [vmem:[#allocation73_spill] sm:$0xff] }
  0xf0   : > { %1609 = vmatpush3.bf16.msk.msra.mxu0 %vm4404_vm8, %v4098_v43  ;;  %vm4409_vm7 = vmpackc.low %vm4406_vm14, %vm4408_vm4  ;;  %vm4421_vm8 = vnez %v4420_v48  ;;  %vm4423_vm14 = vnez %v4422_v50  ;;  %v4551_v44 = vld [vmem:[#allocation72_spill] sm:$0xff]  ;;  %v4553_v46 = vld [vmem:[#allocation71_spill] sm:$0xff] }
  0xf1   : > { %1610 = vmatprep.subr.msk.bf16.mxu0 %vm4409_vm7, %v4098_v43  ;;  %vm4414_vm6 = vmpackc.low %vm4411_vm2, %vm4413_vm11  ;;  %vm4425_vm7 = vnez %v4134_v33  ;;  %vm4426_vm2 = vnez %v4132_v51  ;;  %v4483_v33 = vld [vmem:[#allocation45_spill] sm:$0xff]  ;;  %v4556_v48 = vld [vmem:[#allocation76_spill] sm:$0xff] }
  0xf2   : > { %1631 = vmatpush3.bf16.msk.msra.mxu1 %vm4414_vm6, %v4098_v43  ;;  %vm4419_vm3 = vmpackc.low %vm4416_vm10, %vm4418_vm1  ;;  %vm4428_vm6 = vnez %v4130_v47  ;;  %vm4430_vm10 = vnez %v4429_v52  ;;  %v4486_v47 = vld [vmem:[#allocation50_spill] sm:$0xff]  ;;  %v4488_v51 = vld [vmem:[#allocation49_spill] sm:$0xff] }
  0xf3   : > { %1632 = vmatprep.subr.msk.bf16.mxu1 %vm4419_vm3, %v4098_v43  ;;  %vm4424_vm4 = vmpackc.low %vm4421_vm8, %vm4423_vm14  ;;  %vm4434_vm3 = vnez %v4433_v56  ;;  %vm4436_vm8 = vnez %v4435_v58  ;;  %v4558_v50 = vld [vmem:[#allocation75_spill] sm:$0xff]  ;;  %v4561_v52 = vld [vmem:[#allocation78_spill] sm:$0xff] }
  0xf4   : > { %1611 = vmatpush3.bf16.msk.msra.mxu0 %vm4424_vm4, %v4098_v43  ;;  %vm4427_vm11 = vmpackc.low %vm4425_vm7, %vm4426_vm2  ;;  %vm4439_vm4 = vnez %v4438_v60  ;;  %vm4441_vm7 = vnez %v4440_v62  ;;  %v4567_v56 = vld [vmem:[#allocation82_spill] sm:$0xff]  ;;  %v4570_v58 = vld [vmem:[#allocation81_spill] sm:$0xff] }
  0xf5   : > { %1640 = vmatprep.subr.msk.bf16.mxu0 %vm4427_vm11, %v4098_v43  ;;  %vm4431_vm1 = vmpackc.low %vm4428_vm6, %vm4430_vm10  ;;  %vm4444_vm11 = vnez %v4443_v0  ;;  %vm4446_vm6 = vnez %v4445_v6  ;;  %v4572_v60 = vld [vmem:[#allocation80_spill] sm:$0xff] }
  0xf6   : > { %1633 = vmatpush3.bf16.msk.msra.mxu1 %vm4431_vm1, %v4098_v43  ;;  %vm4437_vm14 = vmpackc.low %vm4434_vm3, %vm4436_vm8  ;;  %vm4451_vm1 = vnez %v4450_v14  ;;  %vm4453_vm3 = vnez %v4452_v17 }
  0xf7   : > { %1059 = vmatmul.mubr.bf16.vlgmr.msra.gmra.mxu0 %v4432_v54  ;;  %1662 = vmatprep.subr.msk.bf16.mxu1 %vm4437_vm14, %v4098_v43  ;;  %vm4442_vm2 = vmpackc.low %vm4439_vm4, %vm4441_vm7  ;;  %vm4457_vm14 = vnez %v4456_v29  ;;  %vm4459_vm4 = vnez %v4458_v37  ;;  %v4563_v54 = vld [vmem:[#allocation77_spill] sm:$0xff] }
  0xf8   : > { %1641 = vmatpush3.bf16.msk.msra.mxu0 %vm4442_vm2, %v4098_v43  ;;  %vm4447_vm10 = vmpackc.low %vm4444_vm11, %vm4446_vm6  ;;  %1138 = vmatprep.mubr.bf16.mxu0 %v4448_v9  ;;  %vm4462_vm2 = vnez %v4461_v41  ;;  %vm4464_vm11 = vnez %v4463_v49 }
  0xf9   : > { %1642 = vmatprep.subr.msk.bf16.mxu0 %vm4447_vm10, %v4098_v43  ;;  %1099 = vmatmul.mubr.bf16.vlgmr.msra.gmra.mxu1 %v4449_v12  ;;  %vm4454_vm8 = vmpackc.low %vm4451_vm1, %vm4453_vm3  ;;  %vm4467_vm10 = vnez %v4466_v53  ;;  %vm4469_vm1 = vnez %v4468_v57 }
  0xfa   : > { %1663 = vmatpush3.bf16.msk.msra.mxu1 %vm4454_vm8, %v4098_v43  ;;  %1178 = vmatprep.mubr.bf16.mxu1 %v4455_v23  ;;  %vm4460_vm7 = vmpackc.low %vm4457_vm14, %vm4459_vm4  ;;  %vm4472_vm8 = vnez %v4471_v61  ;;  %vm4474_vm14 = vnez %v4473_v2 }
  0xfb   : > { %1664 = vmatprep.subr.msk.bf16.mxu1 %vm4460_vm7, %v4098_v43  ;;  %vm4465_vm6 = vmpackc.low %vm4462_vm2, %vm4464_vm11  ;;  %vm4477_vm7 = vnez %v4476_v4  ;;  %vm4479_vm2 = vnez %v4478_v10 }
  0xfc   : > { %1643 = vmatpush3.bf16.msk.msra.mxu0 %vm4465_vm6, %v4098_v43  ;;  %vm4470_vm3 = vmpackc.low %vm4467_vm10, %vm4469_vm1  ;;  %vm4482_vm6 = vnez %v4481_v21  ;;  %vm4484_vm10 = vnez %v4483_v33 }
  0xfd   : > { %1644 = vmatprep.subr.msk.bf16.mxu0 %vm4470_vm3, %v4098_v43  ;;  %vm4475_vm4 = vmpackc.low %vm4472_vm8, %vm4474_vm14  ;;  %vm4487_vm3 = vnez %v4486_v47  ;;  %vm4489_vm8 = vnez %v4488_v51 }
  0xfe   : > { %1665 = vmatpush3.bf16.msk.msra.mxu1 %vm4475_vm4, %v4098_v43  ;;  %vm4480_vm11 = vmpackc.low %vm4477_vm7, %vm4479_vm2  ;;  %vm4492_vm4 = vnez %v4491_v25  ;;  %vm4494_vm7 = vnez %v4493_v31 }
  0xff   : > { %1666 = vmatprep.subr.msk.bf16.mxu1 %vm4480_vm11, %v4098_v43  ;;  %vm4485_vm1 = vmpackc.low %vm4482_vm6, %vm4484_vm10  ;;  %vm4497_vm11 = vnez %v4496_v15  ;;  %vm4499_vm6 = vnez %v4498_v35 }
 0x100   : > { %1645 = vmatpush3.bf16.msk.msra.mxu0 %vm4485_vm1, %v4098_v43  ;;  %vm4490_vm14 = vmpackc.low %vm4487_vm3, %vm4489_vm8  ;;  %vm4502_vm1 = vnez %v4501_v3  ;;  %vm4504_vm3 = vnez %v4503_v55 }
 0x101   : > { %1646 = vmatprep.subr.msk.bf16.mxu0 %vm4490_vm14, %v4098_v43  ;;  %vm4495_vm2 = vmpackc.low %vm4492_vm4, %vm4494_vm7  ;;  %vm4507_vm14 = vnez %v4506_v45  ;;  %vm4509_vm4 = vnez %v4508_v8 }
 0x102   : > { %1667 = vmatpush3.bf16.msk.msra.mxu1 %vm4495_vm2, %v4098_v43  ;;  %vm4500_vm10 = vmpackc.low %vm4497_vm11, %vm4499_vm6  ;;  %vm4512_vm2 = vnez %v4511_v11  ;;  %vm4514_vm11 = vnez %v4513_v13 }
 0x103   : > { %1668 = vmatprep.subr.msk.bf16.mxu1 %vm4500_vm10, %v4098_v43  ;;  %vm4505_vm8 = vmpackc.low %vm4502_vm1, %vm4504_vm3  ;;  %vm4517_vm10 = vnez %v4516_v16  ;;  %vm4519_vm1 = vnez %v4518_v18 }
 0x104   : > { %1647 = vmatpush3.bf16.msk.msra.mxu0 %vm4505_vm8, %v4098_v43  ;;  %vm4510_vm7 = vmpackc.low %vm4507_vm14, %vm4509_vm4  ;;  %vm4522_vm8 = vnez %v4521_v20  ;;  %vm4524_vm14 = vnez %v4523_v22 }
 0x105   : > { %1648 = vmatprep.subr.msk.bf16.mxu0 %vm4510_vm7, %v4098_v43  ;;  %vm4515_vm6 = vmpackc.low %vm4512_vm2, %vm4514_vm11  ;;  %vm4527_vm7 = vnez %v4526_v24  ;;  %vm4529_vm2 = vnez %v4528_v26 }
 0x106   : > { %1669 = vmatpush3.bf16.msk.msra.mxu1 %vm4515_vm6, %v4098_v43  ;;  %vm4520_vm3 = vmpackc.low %vm4517_vm10, %vm4519_vm1  ;;  %vm4532_vm6 = vnez %v4531_v28  ;;  %vm4534_vm10 = vnez %v4533_v30 }
 0x107   : > { %1670 = vmatprep.subr.msk.bf16.mxu1 %vm4520_vm3, %v4098_v43  ;;  %vm4525_vm4 = vmpackc.low %vm4522_vm8, %vm4524_vm14  ;;  %vm4537_vm3 = vnez %v4536_v32  ;;  %vm4539_vm8 = vnez %v4538_v34 }
 0x108   : > { %1649 = vmatpush3.bf16.msk.msra.mxu0 %vm4525_vm4, %v4098_v43  ;;  %vm4530_vm11 = vmpackc.low %vm4527_vm7, %vm4529_vm2  ;;  %vm4542_vm4 = vnez %v4541_v36  ;;  %vm4544_vm7 = vnez %v4543_v38 }
 0x109   : > { %1650 = vmatprep.subr.msk.bf16.mxu0 %vm4530_vm11, %v4098_v43  ;;  %vm4535_vm1 = vmpackc.low %vm4532_vm6, %vm4534_vm10  ;;  %vm4547_vm11 = vnez %v4546_v40  ;;  %vm4549_vm6 = vnez %v4548_v42 }
 0x10a   : > { %1671 = vmatpush3.bf16.msk.msra.mxu1 %vm4535_vm1, %v4098_v43  ;;  %vm4540_vm14 = vmpackc.low %vm4537_vm3, %vm4539_vm8  ;;  %vm4552_vm1 = vnez %v4551_v44  ;;  %vm4554_vm3 = vnez %v4553_v46 }
 0x10b   : > { %1672 = vmatprep.subr.msk.bf16.mxu1 %vm4540_vm14, %v4098_v43  ;;  %vm4545_vm2 = vmpackc.low %vm4542_vm4, %vm4544_vm7  ;;  %vm4557_vm14 = vnez %v4556_v48  ;;  %vm4559_vm4 = vnez %v4558_v50 }
 0x10c   : > { %1651 = vmatpush3.bf16.msk.msra.mxu0 %vm4545_vm2, %v4098_v43  ;;  %vm4550_vm10 = vmpackc.low %vm4547_vm11, %vm4549_vm6  ;;  %vm4562_vm2 = vnez %v4561_v52  ;;  %vm4564_vm11 = vnez %v4563_v54 }
 0x10d   : > { %1652 = vmatprep.subr.msk.bf16.mxu0 %vm4550_vm10, %v4098_v43  ;;  %vm4555_vm8 = vmpackc.low %vm4552_vm1, %vm4554_vm3  ;;  %vm4566_vm10 = vnez %v4302_v39  ;;  %vm4568_vm1 = vnez %v4567_v56  ;;  %v4578_v39 = vld [vmem:[#allocation79_spill] sm:$0xff] }
 0x10e   : > { %1673 = vmatpush3.bf16.msk.msra.mxu1 %vm4555_vm8, %v4098_v43  ;;  %vm4560_vm7 = vmpackc.low %vm4557_vm14, %vm4559_vm4  ;;  %vm4571_vm8 = vnez %v4570_v58  ;;  %vm4573_vm14 = vnez %v4572_v60 }
 0x10f   : > { %1674 = vmatprep.subr.msk.bf16.mxu1 %vm4560_vm7, %v4098_v43  ;;  %vm4565_vm6 = vmpackc.low %vm4562_vm2, %vm4564_vm11 }
 0x110   : > { %1653 = vmatpush3.bf16.msk.msra.mxu0 %vm4565_vm6, %v4098_v43  ;;  %vm4569_vm3 = vmpackc.low %vm4566_vm10, %vm4568_vm1 }
 0x111   : > { %1654 = vmatprep.subr.msk.bf16.mxu0 %vm4569_vm3, %v4098_v43  ;;  %vm4574_vm4 = vmpackc.low %vm4571_vm8, %vm4573_vm14 }
 0x112   : > { %1675 = vmatpush3.bf16.msk.msra.mxu1 %vm4574_vm4, %v4098_v43  ;;  %vm4575_vm7 = vmpackc.low %vm3253_vm13, %vm3245_vm0 }
 0x113   : > { %1676 = vmatprep.subr.msk.bf16.mxu1 %vm4575_vm7, %v4098_v43  ;;  %vm4576_vm2 = vmpackc.low %vm3275_vm5, %vm3269_vm12 }
 0x114   : > { %1655 = vmatpush3.bf16.msk.msra.mxu0 %vm4576_vm2, %v4098_v43  ;;  %vm4577_vm11 = vmpackc.low %vm3295_vm15, %vm3291_vm9 }
 0x116   : > { %1677 = vmatpush3.bf16.msk.msra.mxu1 %vm4577_vm11, %v4098_v43 }
 0x117   : > { %1139 = vmatmul.mubr.bf16.vlgmr.msra.gmra.mxu0 %v4578_v39 }
 0x119   : > { %1179 = vmatmul.mubr.bf16.vlgmr.msra.gmra.mxu1 %v3212_v59 }
 0x134   : > { %v1524_v19 = vpop.f32.mrf.mxu0 }
 0x136   : > { %v1525_v7 = vpop.f32.mrf.mxu0 }
 0x137   : > { %v1546_v62 = vpop.f32.mrf.mxu1  ;;  %v1526_v0 = vadd.f32 %v1525_v7, %v1524_v19 }
 0x138   : > { %v1527_v27 = vpop.f32.mrf.mxu0 }
 0x139   : > { %v1547_v6 = vpop.f32.mrf.mxu1 }
 0x13a   : > { %v1548_v1 = vadd.f32 %v1547_v6, %v1546_v62  ;;  %v1528_v9 = vpop.f32.mrf.mxu0 }
 0x13b   : > { %v1549_v12 = vpop.f32.mrf.mxu1 }
 0x13c   : > { %v941_v14 = vadd.f32 %v1548_v1, %v1526_v0 }
 0x13d   : > { %v1550_v17 = vpop.f32.mrf.mxu1 }
 0x195   : > { %v1568_v5 = vpop.f32.mrf.mxu0 }
 0x197   : > { %v1569_v23 = vpop.f32.mrf.mxu0 }
 0x198   : > { %v1570_v33 = vadd.f32 %v1569_v23, %v1568_v5 }
 0x199   : > { %v1590_v63 = vpop.f32.mrf.mxu1  ;;  %v1571_v29 = vpop.f32.mrf.mxu0 }
 0x19a   : > { %v981_v47 = vadd.f32 %v1570_v33, %v941_v14 }
 0x19b   : > { %v1591_v43 = vpop.f32.mrf.mxu1  ;;  %v1572_v37 = vpop.f32.mrf.mxu0 }
 0x19c   : > { %v1592_v51 = vadd.f32 %v1591_v43, %v1590_v63 }
 0x19d   : > { %v1593_v41 = vpop.f32.mrf.mxu1 }
 0x19e   : > { %v1021_v31 = vadd.f32 %v1592_v51, %v981_v47 }
 0x19f   : > { %v1594_v49 = vpop.f32.mrf.mxu1 }
 0x1b7   : > { %v1612_v59 = vpop.f32.mrf.mxu0 }
 0x1b9   : > { %v1613_v53 = vpop.f32.mrf.mxu0  ;;  %v1634_v57 = vpop.f32.mrf.mxu1 }
 0x1ba   : > { %v1614_v25 = vadd.f32 %v1613_v53, %v1612_v59 }
 0x1bb   : > { %v1615_v61 = vpop.f32.mrf.mxu0  ;;  %v1635_v2 = vpop.f32.mrf.mxu1 }
 0x1bc   : > { %v1061_v15 = vadd.f32 %v1614_v25, %v1021_v31  ;;  %v1636_v35 = vadd.f32 %v1635_v2, %v1634_v57 }
 0x1bd   : > { %v1616_v4 = vpop.f32.mrf.mxu0  ;;  %v1637_v10 = vpop.f32.mrf.mxu1 }
 0x1be   : > { %v1101_v45 = vadd.f32 %v1636_v35, %v1061_v15 }
 0x1bf   : > { %v1638_v21 = vpop.f32.mrf.mxu1 }
 0x1d7   : > { %v1656_v3 = vpop.f32.mrf.mxu0 }
 0x1d9   : > { %v1657_v55 = vpop.f32.mrf.mxu0  ;;  %v1678_v8 = vpop.f32.mrf.mxu1 }
 0x1da   : > { %v1658_v11 = vadd.f32 %v1657_v55, %v1656_v3 }
 0x1db   : > { %v1659_v13 = vpop.f32.mrf.mxu0  ;;  %v1679_v18 = vpop.f32.mrf.mxu1 }
 0x1dc   : > { %v1141_v16 = vadd.f32 %v1658_v11, %v1101_v45  ;;  %v1680_v20 = vadd.f32 %v1679_v18, %v1678_v8 }
 0x1dd   : > { %v1660_v22 = vpop.f32.mrf.mxu0  ;;  %v1681_v24 = vpop.f32.mrf.mxu1 }
 0x1de   : > { %v1181_v26 = vadd.f32 %v1680_v20, %v1141_v16 }
 0x1df   : > { %v1682_v28 = vpop.f32.mrf.mxu1 }
 0x1e0   : > { %v1186_v30 = vmul.f32 0.125, %v1181_v26 }
 0x1e2   : > { %1187 = vst [vmem:[%s114_s15] sm:$0xff] %v1186_v30 }
 0x1e3 PF: > { %s11_s6 = sadd.s32 1, %s1699_s6  }
 0x1e4   : > { %p8_p4 = scmp.ge.s32.totalorder %s11_s6, 4  }
 0x1e6   :  { %10 = sbr.rel (!%p8_p4) target bundleno = 1 (0x1), region = 54 }

</bundles_post_ra>
